<compile_context>
chip_gen: v7x
topology: tpu7x:2x2x1
jax: 0.10.0
libtpu: 0.0.40
codegen_flags: <defaults>
</compile_context>

<pallas_src>
import math

import jax
import jax.numpy as jnp
from jax.experimental import pallas as pl
from jax.experimental.pallas import tpu as pltpu


def _make_kernel(S, D, H, has_mask, compute_dtype):
    HD = D // H
    scale = 1.0 / math.sqrt(HD)
    cdt = compute_dtype

    def _forward(x_ref, mask_ref,
                 ln1w_ref, ln1b_ref,
                 w_in_ref, b_in_ref, w_out_ref, b_out_ref,
                 ln2w_ref, ln2b_ref,
                 w_fc_ref, b_fc_ref, w_pr_ref, b_pr_ref,
                 o_ref):
        x = x_ref[...].astype(jnp.float32)                      # (S, D) f32

        def layernorm(v, w_ref, b_ref):
            # matches torch LayerNorm: population variance, eps=1e-5, fp32 math
            mu = jnp.mean(v, axis=-1, keepdims=True)
            var = jnp.mean((v - mu) ** 2, axis=-1, keepdims=True)
            return ((v - mu) * jax.lax.rsqrt(var + 1e-5)
                    * w_ref[...].astype(jnp.float32)
                    + b_ref[...].astype(jnp.float32))

        # ---------------- attention branch ----------------
        h = layernorm(x, ln1w_ref, ln1b_ref)
        qkv = jnp.dot(h.astype(cdt), w_in_ref[...],
                      preferred_element_type=jnp.float32) + b_in_ref[...]
        q = qkv[:, 0 * D:1 * D] * scale
        k = qkv[:, 1 * D:2 * D]
        v = qkv[:, 2 * D:3 * D]

        # Stack heads into a leading batch dim -> one batched MXU contraction
        # per stage instead of 2*H small matmuls + a lane-dim concatenate
        # of H live head outputs.
        qh = jnp.stack([q[:, i * HD:(i + 1) * HD] for i in range(H)],
                       axis=0).astype(cdt)                      # (H, S, HD)
        kh = jnp.stack([k[:, i * HD:(i + 1) * HD] for i in range(H)],
                       axis=0).astype(cdt)
        vh = jnp.stack([v[:, i * HD:(i + 1) * HD] for i in range(H)],
                       axis=0).astype(cdt)

        s = jnp.einsum("hqd,hkd->hqk", qh, kh,
                       preferred_element_type=jnp.float32)      # (H, S, S) f32
        if has_mask:
            s = s + mask_ref[...].astype(jnp.float32)[None, :, :]
        s = s - jnp.max(s, axis=-1, keepdims=True)
        p = jnp.exp(s)                                          # unnormalized
        inv = pl.reciprocal(jnp.sum(p, axis=-1, keepdims=True),
                            approx=True)                        # (H, S, 1)

        o = jnp.einsum("hqk,hkd->hqd", p.astype(cdt), vh,
                       preferred_element_type=jnp.float32)      # (H, S, HD)
        o = o * inv               # deferred softmax normalization (HD-wide)
        attn = jnp.concatenate([o[i] for i in range(H)], axis=-1)   # (S, D)
        attn = jnp.dot(attn.astype(cdt), w_out_ref[...],
                       preferred_element_type=jnp.float32) + b_out_ref[...]
        x1 = x + attn

        # ---------------- MLP branch ----------------
        # TODO(synk): for v7x-scale d_model, stream w_fc/w_pr over the 4*D
        # hidden dim (K-tiling with an f32 VMEM accumulator) and add a
        # flash-style S-tile grid axis; at these sizes (and on v5e/v6e's
        # 128 MiB VMEM) whole-weight-resident is optimal.
        h2 = layernorm(x1, ln2w_ref, ln2b_ref)
        g = jnp.dot(h2.astype(cdt), w_fc_ref[...],
                    preferred_element_type=jnp.float32) + b_fc_ref[...]
        g = g * jax.nn.sigmoid(1.702 * g)                       # QuickGELU (f32)
        mlp = jnp.dot(g.astype(cdt), w_pr_ref[...],
                      preferred_element_type=jnp.float32) + b_pr_ref[...]

        o_ref[...] = (x1 + mlp).astype(o_ref.dtype)

    if has_mask:
        def kernel(x_ref, mask_ref, *rest):
            _forward(x_ref, mask_ref, *rest)
    else:
        def kernel(x_ref, *rest):
            _forward(x_ref, None, *rest)
    return kernel


def residual_attention_block(x, params, n_head, attn_mask=None,
                             compute_dtype=jnp.bfloat16):
    """x: (S, B, D) float array (PyTorch batch_first=False layout)."""
    S, B, D = x.shape
    has_mask = attn_mask is not None

    # Contiguous per-batch (S, D) slabs: unit-stride DMA, full (8,128) tiles.
    xb = jnp.transpose(x, (1, 0, 2))

    cdt = compute_dtype
    # Pre-transpose + pre-cast matmul weights (wrapper glue, not hot path):
    # the kernel feeds bf16 operands to the MXU and accumulates in f32.
    # Biases / LN params stay f32 (added / applied in f32).
    w_args = [
        params["ln1_w"], params["ln1_b"],
        params["in_proj_w"].T.astype(cdt), params["in_proj_b"],
        params["out_proj_w"].T.astype(cdt), params["out_proj_b"],
        params["ln2_w"], params["ln2_b"],
        params["fc_w"].T.astype(cdt), params["fc_b"],
        params["proj_w"].T.astype(cdt), params["proj_b"],
    ]
    mask_args = [attn_mask.astype(jnp.float32)] if has_mask else []

    kernel = _make_kernel(S, D, n_head, has_mask, cdt)

    # VMEM budget: constants (x2 to also cover the default-double-buffer
    # fallback), double-buffered x/out blocks, and an f32 activation set.
    const_bytes = sum(int(a.size) * a.dtype.itemsize for a in mask_args + w_args)
    io_bytes = 2 * 2 * S * D * x.dtype.itemsize
    act_bytes = 4 * (3 * S * D + 2 * n_head * S * S + 2 * 4 * S * D + 6 * S * D)
    vmem_limit = int(min(64 * 1024 * 1024,
                         max(4 * 1024 * 1024,
                             2 * const_bytes + io_bytes + act_bytes + (2 << 20))))

    def build(const_pipeline_mode):
        def const_spec(shape):
            n = len(shape)
            kwargs = {}
            if const_pipeline_mode is not None:
                kwargs["pipeline_mode"] = const_pipeline_mode
            return pl.BlockSpec(shape, lambda b, _n=n: (0,) * _n, **kwargs)

        in_specs = ([pl.BlockSpec((None, S, D), lambda b: (b, 0, 0))]
                    + [const_spec(a.shape) for a in mask_args]
                    + [const_spec(w.shape) for w in w_args])
        out_spec = pl.BlockSpec((None, S, D), lambda b: (b, 0, 0))

        return pl.pallas_call(
            kernel,
            out_shape=jax.ShapeDtypeStruct((B, S, D), x.dtype),
            grid=(B,),
            in_specs=in_specs,
            out_specs=out_spec,
            compiler_params=pltpu.CompilerParams(
                dimension_semantics=("parallel",),
                vmem_limit_bytes=vmem_limit),
        )

    args = (xb, *mask_args, *w_args)
    try:
        # Grid-invariant weights/mask: single-buffer them (halves weight VMEM).
        out_b = build(pl.Buffered(1))(*args)
    except Exception:
        # Pallas version without per-BlockSpec pipeline_mode -> default buffering.
        out_b = build(None)(*args)

    return jnp.transpose(out_b, (1, 0, 2))


def reference(x, params, n_head, attn_mask=None):
    """Pure-JAX f32 reference reproducing the PyTorch forward."""
    S, B, D = x.shape
    HD = D // n_head

    def ln(v, w, b):
        mu = jnp.mean(v, -1, keepdims=True)
        var = jnp.mean((v - mu) ** 2, -1, keepdims=True)
        return (v - mu) / jnp.sqrt(var + 1e-5) * w + b

    h = ln(x, params["ln1_w"][0], params["ln1_b"][0])
    qkv = jnp.einsum("sbd,ed->sbe", h, params["in_proj_w"]) + params["in_proj_b"][0]
    q, k, v = jnp.split(qkv, 3, axis=-1)
    q = q.reshape(S, B, n_head, HD) / math.sqrt(HD)
    k = k.reshape(S, B, n_head, HD)
    v = v.reshape(S, B, n_head, HD)
    scores = jnp.einsum("sbhd,tbhd->bhst", q, k)
    if attn_mask is not None:
        scores = scores + attn_mask
    p = jax.nn.softmax(scores, axis=-1)
    o = jnp.einsum("bhst,tbhd->sbhd", p, v).reshape(S, B, D)
    o = jnp.einsum("sbd,ed->sbe", o, params["out_proj_w"]) + params["out_proj_b"][0]
    x1 = x + o
    h2 = ln(x1, params["ln2_w"][0], params["ln2_b"][0])
    g = jnp.einsum("sbd,fd->sbf", h2, params["fc_w"]) + params["fc_b"][0]
    g = g * jax.nn.sigmoid(1.702 * g)
    m = jnp.einsum("sbf,df->sbd", g, params["proj_w"]) + params["proj_b"][0]
    return x1 + m


def init_params(key, d_model):
    """Deterministic synthetic parameters (shapes match nn.MultiheadAttention,
    LayerNorm and the MLP of the PyTorch module). Biases kept 2-D (1, N) for
    clean TPU layouts / broadcasting."""
    ks = jax.random.split(key, 8)
    s = 0.05
    return {
        "ln1_w":      jnp.ones((1, d_model), jnp.float32),
        "ln1_b":      jnp.zeros((1, d_model), jnp.float32),
        "in_proj_w":  s * jax.random.normal(ks[0], (3 * d_model, d_model), jnp.float32),
        "in_proj_b":  s * jax.random.normal(ks[1], (1, 3 * d_model), jnp.float32),
        "out_proj_w": s * jax.random.normal(ks[2], (d_model, d_model), jnp.float32),
        "out_proj_b": s * jax.random.normal(ks[3], (1, d_model), jnp.float32),
        "ln2_w":      jnp.ones((1, d_model), jnp.float32),
        "ln2_b":      jnp.zeros((1, d_model), jnp.float32),
        "fc_w":       s * jax.random.normal(ks[4], (4 * d_model, d_model), jnp.float32),
        "fc_b":       s * jax.random.normal(ks[5], (1, 4 * d_model), jnp.float32),
        "proj_w":     s * jax.random.normal(ks[6], (d_model, 4 * d_model), jnp.float32),
        "proj_b":     s * jax.random.normal(ks[7], (1, d_model), jnp.float32),
    }


if __name__ == "__main__":
    S, B, D, H = 8, 2, 32, 4   # seq=8, batch=2, d_model=32, n_head=4

    key = jax.random.PRNGKey(0)
    kx, kp = jax.random.split(key)
    x = jax.random.normal(kx, (S, B, D), dtype=jnp.float32)
    params = init_params(kp, D)

    # --- no-mask path (mask specialized away) ---
    out = residual_attention_block(x, params, n_head=H, attn_mask=None)
    out = jax.block_until_ready(out)
    ref = reference(x, params, n_head=H, attn_mask=None)
    assert out.shape == (S, B, D) and out.dtype == x.dtype
    assert jnp.allclose(out, ref, atol=2e-2, rtol=2e-2), "mismatch (no mask)"

    # --- causal additive mask path ---
    causal = jnp.where(jnp.tril(jnp.ones((S, S), dtype=bool)), 0.0, -1e9)
    causal = causal.astype(jnp.float32)
    out_m = residual_attention_block(x, params, n_head=H, attn_mask=causal)
    out_m = jax.block_until_ready(out_m)
    ref_m = reference(x, params, n_head=H, attn_mask=causal)
    assert jnp.allclose(out_m, ref_m, atol=2e-2, rtol=2e-2), "mismatch (masked)"

    print("KERNEL_OK")
</pallas_src>

<mosaic_0001>
module attributes {stable_mosaic.version = 11 : i64} {
  func.func @kernel(%arg0: i32, %arg1: memref<1x8x32xf32, #tpu.memory_space<vmem>>, %arg2: memref<1x32xf32, #tpu.memory_space<vmem>>, %arg3: memref<1x32xf32, #tpu.memory_space<vmem>>, %arg4: memref<32x96xbf16, #tpu.memory_space<vmem>>, %arg5: memref<1x96xf32, #tpu.memory_space<vmem>>, %arg6: memref<32x32xbf16, #tpu.memory_space<vmem>>, %arg7: memref<1x32xf32, #tpu.memory_space<vmem>>, %arg8: memref<1x32xf32, #tpu.memory_space<vmem>>, %arg9: memref<1x32xf32, #tpu.memory_space<vmem>>, %arg10: memref<32x128xbf16, #tpu.memory_space<vmem>>, %arg11: memref<1x128xf32, #tpu.memory_space<vmem>>, %arg12: memref<128x32xbf16, #tpu.memory_space<vmem>>, %arg13: memref<1x32xf32, #tpu.memory_space<vmem>>, %arg14: memref<1x8x32xf32, #tpu.memory_space<vmem>>) attributes {dimension_semantics = [#tpu.dimension_semantics<parallel>], iteration_bounds = array<i64: 2>, scalar_prefetch = 0 : i64, scratch_operands = 0 : i64, tpu.core_type = #tpu.core_type<tc>, window_params = [{transform_indices = @transform_0, window_bounds = array<i64: 1, 8, 32>}, {pipeline_mode = #tpu.pipeline_mode<synchronous>, transform_indices = @transform_1, window_bounds = array<i64: 1, 32>}, {pipeline_mode = #tpu.pipeline_mode<synchronous>, transform_indices = @transform_2, window_bounds = array<i64: 1, 32>}, {pipeline_mode = #tpu.pipeline_mode<synchronous>, transform_indices = @transform_3, window_bounds = array<i64: 32, 96>}, {pipeline_mode = #tpu.pipeline_mode<synchronous>, transform_indices = @transform_4, window_bounds = array<i64: 1, 96>}, {pipeline_mode = #tpu.pipeline_mode<synchronous>, transform_indices = @transform_5, window_bounds = array<i64: 32, 32>}, {pipeline_mode = #tpu.pipeline_mode<synchronous>, transform_indices = @transform_6, window_bounds = array<i64: 1, 32>}, {pipeline_mode = #tpu.pipeline_mode<synchronous>, transform_indices = @transform_7, window_bounds = array<i64: 1, 32>}, {pipeline_mode = #tpu.pipeline_mode<synchronous>, transform_indices = @transform_8, window_bounds = array<i64: 1, 32>}, {pipeline_mode = #tpu.pipeline_mode<synchronous>, transform_indices = @transform_9, window_bounds = array<i64: 32, 128>}, {pipeline_mode = #tpu.pipeline_mode<synchronous>, transform_indices = @transform_10, window_bounds = array<i64: 1, 128>}, {pipeline_mode = #tpu.pipeline_mode<synchronous>, transform_indices = @transform_11, window_bounds = array<i64: 128, 32>}, {pipeline_mode = #tpu.pipeline_mode<synchronous>, transform_indices = @transform_12, window_bounds = array<i64: 1, 32>}, {transform_indices = @transform_13, window_bounds = array<i64: 1, 8, 32>}]} {
    %c0 = arith.constant 0 : index
    %c0_0 = arith.constant 0 : index
    %c0_1 = arith.constant 0 : index
    %0 = vector.load %arg1[%c0, %c0_0, %c0_1] : memref<1x8x32xf32, #tpu.memory_space<vmem>>, vector<1x8x32xf32>
    %1 = vector.shape_cast %0 : vector<1x8x32xf32> to vector<8x32xf32>
    %cst = arith.constant dense<0.000000e+00> : vector<8xf32>
    %2 = vector.multi_reduction <add>, %1, %cst [1] : vector<8x32xf32> to vector<8xf32>
    %3 = vector.shape_cast %2 : vector<8xf32> to vector<8x1xf32>
    %cst_2 = arith.constant 3.200000e+01 : f32
    %4 = vector.broadcast %cst_2 : f32 to vector<8x1xf32>
    %5 = arith.divf %3, %4 : vector<8x1xf32>
    %6 = vector.broadcast %5 : vector<8x1xf32> to vector<8x32xf32>
    %7 = arith.subf %1, %6 : vector<8x32xf32>
    %8 = arith.mulf %7, %7 : vector<8x32xf32>
    %cst_3 = arith.constant dense<0.000000e+00> : vector<8xf32>
    %9 = vector.multi_reduction <add>, %8, %cst_3 [1] : vector<8x32xf32> to vector<8xf32>
    %10 = vector.shape_cast %9 : vector<8xf32> to vector<8x1xf32>
    %cst_4 = arith.constant 3.200000e+01 : f32
    %11 = vector.broadcast %cst_4 : f32 to vector<8x1xf32>
    %12 = arith.divf %10, %11 : vector<8x1xf32>
    %13 = vector.broadcast %5 : vector<8x1xf32> to vector<8x32xf32>
    %14 = arith.subf %1, %13 : vector<8x32xf32>
    %cst_5 = arith.constant 9.99999974E-6 : f32
    %15 = vector.broadcast %cst_5 : f32 to vector<8x1xf32>
    %16 = arith.addf %12, %15 : vector<8x1xf32>
    %17 = math.rsqrt %16 : vector<8x1xf32>
    %18 = vector.broadcast %17 : vector<8x1xf32> to vector<8x32xf32>
    %19 = arith.mulf %14, %18 : vector<8x32xf32>
    %c0_6 = arith.constant 0 : index
    %c0_7 = arith.constant 0 : index
    %20 = vector.load %arg2[%c0_6, %c0_7] : memref<1x32xf32, #tpu.memory_space<vmem>>, vector<1x32xf32>
    %21 = vector.broadcast %20 : vector<1x32xf32> to vector<8x32xf32>
    %22 = arith.mulf %19, %21 : vector<8x32xf32>
    %c0_8 = arith.constant 0 : index
    %c0_9 = arith.constant 0 : index
    %23 = vector.load %arg3[%c0_8, %c0_9] : memref<1x32xf32, #tpu.memory_space<vmem>>, vector<1x32xf32>
    %24 = vector.broadcast %23 : vector<1x32xf32> to vector<8x32xf32>
    %25 = arith.addf %22, %24 : vector<8x32xf32>
    %26 = arith.truncf %25 : vector<8x32xf32> to vector<8x32xbf16>
    %c0_10 = arith.constant 0 : index
    %c0_11 = arith.constant 0 : index
    %27 = vector.load %arg4[%c0_10, %c0_11] : memref<32x96xbf16, #tpu.memory_space<vmem>>, vector<32x96xbf16>
    %cst_12 = arith.constant dense<0.000000e+00> : vector<8x96xf32>
    %28 = tpu.matmul %26, %27, %cst_12 {dimension_numbers = #tpu.dot_dimension_numbers<[1], [0], [0], [1], [0, 0, 1, 1], [], []>} : vector<8x32xbf16>, vector<32x96xbf16>, vector<8x96xf32> -> vector<8x96xf32>
    %c0_13 = arith.constant 0 : index
    %c0_14 = arith.constant 0 : index
    %29 = vector.load %arg5[%c0_13, %c0_14] : memref<1x96xf32, #tpu.memory_space<vmem>>, vector<1x96xf32>
    %30 = vector.broadcast %29 : vector<1x96xf32> to vector<8x96xf32>
    %31 = arith.addf %28, %30 : vector<8x96xf32>
    %32 = vector.extract_strided_slice %31 {offsets = [0, 0], sizes = [8, 32], strides = [1, 1]} : vector<8x96xf32> to vector<8x32xf32>
    %cst_15 = arith.constant 0.353553385 : f32
    %33 = vector.broadcast %cst_15 : f32 to vector<8x32xf32>
    %34 = arith.mulf %32, %33 : vector<8x32xf32>
    %35 = vector.extract_strided_slice %31 {offsets = [0, 32], sizes = [8, 32], strides = [1, 1]} : vector<8x96xf32> to vector<8x32xf32>
    %36 = vector.extract_strided_slice %31 {offsets = [0, 64], sizes = [8, 32], strides = [1, 1]} : vector<8x96xf32> to vector<8x32xf32>
    %37 = vector.extract_strided_slice %34 {offsets = [0, 0], sizes = [8, 8], strides = [1, 1]} : vector<8x32xf32> to vector<8x8xf32>
    %38 = vector.extract_strided_slice %34 {offsets = [0, 8], sizes = [8, 8], strides = [1, 1]} : vector<8x32xf32> to vector<8x8xf32>
    %39 = vector.extract_strided_slice %34 {offsets = [0, 16], sizes = [8, 8], strides = [1, 1]} : vector<8x32xf32> to vector<8x8xf32>
    %40 = vector.extract_strided_slice %34 {offsets = [0, 24], sizes = [8, 8], strides = [1, 1]} : vector<8x32xf32> to vector<8x8xf32>
    %41 = vector.shape_cast %37 : vector<8x8xf32> to vector<1x8x8xf32>
    %42 = vector.shape_cast %38 : vector<8x8xf32> to vector<1x8x8xf32>
    %43 = vector.shape_cast %39 : vector<8x8xf32> to vector<1x8x8xf32>
    %44 = vector.shape_cast %40 : vector<8x8xf32> to vector<1x8x8xf32>
    %45 = tpu.concatenate %41, %42, %43, %44 in 0 : vector<1x8x8xf32>, vector<1x8x8xf32>, vector<1x8x8xf32>, vector<1x8x8xf32> -> vector<4x8x8xf32>
    %46 = arith.truncf %45 : vector<4x8x8xf32> to vector<4x8x8xbf16>
    %47 = vector.extract_strided_slice %35 {offsets = [0, 0], sizes = [8, 8], strides = [1, 1]} : vector<8x32xf32> to vector<8x8xf32>
    %48 = vector.extract_strided_slice %35 {offsets = [0, 8], sizes = [8, 8], strides = [1, 1]} : vector<8x32xf32> to vector<8x8xf32>
    %49 = vector.extract_strided_slice %35 {offsets = [0, 16], sizes = [8, 8], strides = [1, 1]} : vector<8x32xf32> to vector<8x8xf32>
    %50 = vector.extract_strided_slice %35 {offsets = [0, 24], sizes = [8, 8], strides = [1, 1]} : vector<8x32xf32> to vector<8x8xf32>
    %51 = vector.shape_cast %47 : vector<8x8xf32> to vector<1x8x8xf32>
    %52 = vector.shape_cast %48 : vector<8x8xf32> to vector<1x8x8xf32>
    %53 = vector.shape_cast %49 : vector<8x8xf32> to vector<1x8x8xf32>
    %54 = vector.shape_cast %50 : vector<8x8xf32> to vector<1x8x8xf32>
    %55 = tpu.concatenate %51, %52, %53, %54 in 0 : vector<1x8x8xf32>, vector<1x8x8xf32>, vector<1x8x8xf32>, vector<1x8x8xf32> -> vector<4x8x8xf32>
    %56 = arith.truncf %55 : vector<4x8x8xf32> to vector<4x8x8xbf16>
    %57 = vector.extract_strided_slice %36 {offsets = [0, 0], sizes = [8, 8], strides = [1, 1]} : vector<8x32xf32> to vector<8x8xf32>
    %58 = vector.extract_strided_slice %36 {offsets = [0, 8], sizes = [8, 8], strides = [1, 1]} : vector<8x32xf32> to vector<8x8xf32>
    %59 = vector.extract_strided_slice %36 {offsets = [0, 16], sizes = [8, 8], strides = [1, 1]} : vector<8x32xf32> to vector<8x8xf32>
    %60 = vector.extract_strided_slice %36 {offsets = [0, 24], sizes = [8, 8], strides = [1, 1]} : vector<8x32xf32> to vector<8x8xf32>
    %61 = vector.shape_cast %57 : vector<8x8xf32> to vector<1x8x8xf32>
    %62 = vector.shape_cast %58 : vector<8x8xf32> to vector<1x8x8xf32>
    %63 = vector.shape_cast %59 : vector<8x8xf32> to vector<1x8x8xf32>
    %64 = vector.shape_cast %60 : vector<8x8xf32> to vector<1x8x8xf32>
    %65 = tpu.concatenate %61, %62, %63, %64 in 0 : vector<1x8x8xf32>, vector<1x8x8xf32>, vector<1x8x8xf32>, vector<1x8x8xf32> -> vector<4x8x8xf32>
    %66 = arith.truncf %65 : vector<4x8x8xf32> to vector<4x8x8xbf16>
    "tpu.trace_start"() <{level = 10 : i32, message = "hqd,hkd->hqk"}> : () -> ()
    %cst_16 = arith.constant dense<0.000000e+00> : vector<4x8x8xf32>
    %67 = tpu.matmul %46, %56, %cst_16 {dimension_numbers = #tpu.dot_dimension_numbers<[2], [2], [1], [1], [0, 0, 0, 1, 1, 1], [0], [0]>} : vector<4x8x8xbf16>, vector<4x8x8xbf16>, vector<4x8x8xf32> -> vector<4x8x8xf32>
    "tpu.trace_stop"() : () -> ()
    %cst_17 = arith.constant dense<0xFF800000> : vector<4x8xf32>
    %68 = vector.multi_reduction <maximumf>, %67, %cst_17 [2] : vector<4x8x8xf32> to vector<4x8xf32>
    %69 = vector.shape_cast %68 : vector<4x8xf32> to vector<4x8x1xf32>
    %70 = vector.broadcast %69 : vector<4x8x1xf32> to vector<4x8x8xf32>
    %71 = arith.subf %67, %70 : vector<4x8x8xf32>
    %72 = math.exp %71 : vector<4x8x8xf32>
    %cst_18 = arith.constant dense<0.000000e+00> : vector<4x8xf32>
    %73 = vector.multi_reduction <add>, %72, %cst_18 [2] : vector<4x8x8xf32> to vector<4x8xf32>
    %74 = vector.shape_cast %73 : vector<4x8xf32> to vector<4x8x1xf32>
    %75 = tpu.reciprocal %74 {approx = true} : vector<4x8x1xf32> -> vector<4x8x1xf32>
    %76 = arith.truncf %72 : vector<4x8x8xf32> to vector<4x8x8xbf16>
    "tpu.trace_start"() <{level = 10 : i32, message = "hqk,hkd->hqd"}> : () -> ()
    %cst_19 = arith.constant dense<0.000000e+00> : vector<4x8x8xf32>
    %77 = tpu.matmul %76, %66, %cst_19 {dimension_numbers = #tpu.dot_dimension_numbers<[2], [1], [1], [2], [0, 0, 0, 1, 1, 2], [0], [0]>} : vector<4x8x8xbf16>, vector<4x8x8xbf16>, vector<4x8x8xf32> -> vector<4x8x8xf32>
    "tpu.trace_stop"() : () -> ()
    %78 = vector.broadcast %75 : vector<4x8x1xf32> to vector<4x8x8xf32>
    %79 = arith.mulf %77, %78 : vector<4x8x8xf32>
    %80 = vector.extract_strided_slice %79 {offsets = [0, 0, 0], sizes = [1, 8, 8], strides = [1, 1, 1]} : vector<4x8x8xf32> to vector<1x8x8xf32>
    %81 = vector.shape_cast %80 : vector<1x8x8xf32> to vector<8x8xf32>
    %82 = vector.extract_strided_slice %79 {offsets = [1, 0, 0], sizes = [1, 8, 8], strides = [1, 1, 1]} : vector<4x8x8xf32> to vector<1x8x8xf32>
    %83 = vector.shape_cast %82 : vector<1x8x8xf32> to vector<8x8xf32>
    %84 = vector.extract_strided_slice %79 {offsets = [2, 0, 0], sizes = [1, 8, 8], strides = [1, 1, 1]} : vector<4x8x8xf32> to vector<1x8x8xf32>
    %85 = vector.shape_cast %84 : vector<1x8x8xf32> to vector<8x8xf32>
    %86 = vector.extract_strided_slice %79 {offsets = [3, 0, 0], sizes = [1, 8, 8], strides = [1, 1, 1]} : vector<4x8x8xf32> to vector<1x8x8xf32>
    %87 = vector.shape_cast %86 : vector<1x8x8xf32> to vector<8x8xf32>
    %88 = tpu.concatenate %81, %83, %85, %87 in 1 : vector<8x8xf32>, vector<8x8xf32>, vector<8x8xf32>, vector<8x8xf32> -> vector<8x32xf32>
    %89 = arith.truncf %88 : vector<8x32xf32> to vector<8x32xbf16>
    %c0_20 = arith.constant 0 : index
    %c0_21 = arith.constant 0 : index
    %90 = vector.load %arg6[%c0_20, %c0_21] : memref<32x32xbf16, #tpu.memory_space<vmem>>, vector<32x32xbf16>
    %cst_22 = arith.constant dense<0.000000e+00> : vector<8x32xf32>
    %91 = tpu.matmul %89, %90, %cst_22 {dimension_numbers = #tpu.dot_dimension_numbers<[1], [0], [0], [1], [0, 0, 1, 1], [], []>} : vector<8x32xbf16>, vector<32x32xbf16>, vector<8x32xf32> -> vector<8x32xf32>
    %c0_23 = arith.constant 0 : index
    %c0_24 = arith.constant 0 : index
    %92 = vector.load %arg7[%c0_23, %c0_24] : memref<1x32xf32, #tpu.memory_space<vmem>>, vector<1x32xf32>
    %93 = vector.broadcast %92 : vector<1x32xf32> to vector<8x32xf32>
    %94 = arith.addf %91, %93 : vector<8x32xf32>
    %95 = arith.addf %1, %94 : vector<8x32xf32>
    %cst_25 = arith.constant dense<0.000000e+00> : vector<8xf32>
    %96 = vector.multi_reduction <add>, %95, %cst_25 [1] : vector<8x32xf32> to vector<8xf32>
    %97 = vector.shape_cast %96 : vector<8xf32> to vector<8x1xf32>
    %cst_26 = arith.constant 3.200000e+01 : f32
    %98 = vector.broadcast %cst_26 : f32 to vector<8x1xf32>
    %99 = arith.divf %97, %98 : vector<8x1xf32>
    %100 = vector.broadcast %99 : vector<8x1xf32> to vector<8x32xf32>
    %101 = arith.subf %95, %100 : vector<8x32xf32>
    %102 = arith.mulf %101, %101 : vector<8x32xf32>
    %cst_27 = arith.constant dense<0.000000e+00> : vector<8xf32>
    %103 = vector.multi_reduction <add>, %102, %cst_27 [1] : vector<8x32xf32> to vector<8xf32>
    %104 = vector.shape_cast %103 : vector<8xf32> to vector<8x1xf32>
    %cst_28 = arith.constant 3.200000e+01 : f32
    %105 = vector.broadcast %cst_28 : f32 to vector<8x1xf32>
    %106 = arith.divf %104, %105 : vector<8x1xf32>
    %107 = vector.broadcast %99 : vector<8x1xf32> to vector<8x32xf32>
    %108 = arith.subf %95, %107 : vector<8x32xf32>
    %cst_29 = arith.constant 9.99999974E-6 : f32
    %109 = vector.broadcast %cst_29 : f32 to vector<8x1xf32>
    %110 = arith.addf %106, %109 : vector<8x1xf32>
    %111 = math.rsqrt %110 : vector<8x1xf32>
    %112 = vector.broadcast %111 : vector<8x1xf32> to vector<8x32xf32>
    %113 = arith.mulf %108, %112 : vector<8x32xf32>
    %c0_30 = arith.constant 0 : index
    %c0_31 = arith.constant 0 : index
    %114 = vector.load %arg8[%c0_30, %c0_31] : memref<1x32xf32, #tpu.memory_space<vmem>>, vector<1x32xf32>
    %115 = vector.broadcast %114 : vector<1x32xf32> to vector<8x32xf32>
    %116 = arith.mulf %113, %115 : vector<8x32xf32>
    %c0_32 = arith.constant 0 : index
    %c0_33 = arith.constant 0 : index
    %117 = vector.load %arg9[%c0_32, %c0_33] : memref<1x32xf32, #tpu.memory_space<vmem>>, vector<1x32xf32>
    %118 = vector.broadcast %117 : vector<1x32xf32> to vector<8x32xf32>
    %119 = arith.addf %116, %118 : vector<8x32xf32>
    %120 = arith.truncf %119 : vector<8x32xf32> to vector<8x32xbf16>
    %c0_34 = arith.constant 0 : index
    %c0_35 = arith.constant 0 : index
    %121 = vector.load %arg10[%c0_34, %c0_35] : memref<32x128xbf16, #tpu.memory_space<vmem>>, vector<32x128xbf16>
    %cst_36 = arith.constant dense<0.000000e+00> : vector<8x128xf32>
    %122 = tpu.matmul %120, %121, %cst_36 {dimension_numbers = #tpu.dot_dimension_numbers<[1], [0], [0], [1], [0, 0, 1, 1], [], []>} : vector<8x32xbf16>, vector<32x128xbf16>, vector<8x128xf32> -> vector<8x128xf32>
    %c0_37 = arith.constant 0 : index
    %c0_38 = arith.constant 0 : index
    %123 = vector.load %arg11[%c0_37, %c0_38] : memref<1x128xf32, #tpu.memory_space<vmem>>, vector<1x128xf32>
    %124 = vector.broadcast %123 : vector<1x128xf32> to vector<8x128xf32>
    %125 = arith.addf %122, %124 : vector<8x128xf32>
    %cst_39 = arith.constant 1.702000e+00 : f32
    %126 = vector.broadcast %cst_39 : f32 to vector<8x128xf32>
    %127 = arith.mulf %126, %125 : vector<8x128xf32>
    %128 = arith.negf %127 : vector<8x128xf32>
    %129 = math.exp %128 : vector<8x128xf32>
    %cst_40 = arith.constant 1.000000e+00 : f32
    %130 = vector.broadcast %cst_40 : f32 to vector<8x128xf32>
    %131 = arith.addf %130, %129 : vector<8x128xf32>
    %132 = arith.divf %130, %131 : vector<8x128xf32>
    %133 = arith.mulf %125, %132 : vector<8x128xf32>
    %134 = arith.truncf %133 : vector<8x128xf32> to vector<8x128xbf16>
    %c0_41 = arith.constant 0 : index
    %c0_42 = arith.constant 0 : index
    %135 = vector.load %arg12[%c0_41, %c0_42] : memref<128x32xbf16, #tpu.memory_space<vmem>>, vector<128x32xbf16>
    %cst_43 = arith.constant dense<0.000000e+00> : vector<8x32xf32>
    %136 = tpu.matmul %134, %135, %cst_43 {dimension_numbers = #tpu.dot_dimension_numbers<[1], [0], [0], [1], [0, 0, 1, 1], [], []>} : vector<8x128xbf16>, vector<128x32xbf16>, vector<8x32xf32> -> vector<8x32xf32>
    %c0_44 = arith.constant 0 : index
    %c0_45 = arith.constant 0 : index
    %137 = vector.load %arg13[%c0_44, %c0_45] : memref<1x32xf32, #tpu.memory_space<vmem>>, vector<1x32xf32>
    %138 = vector.broadcast %137 : vector<1x32xf32> to vector<8x32xf32>
    %139 = arith.addf %136, %138 : vector<8x32xf32>
    %140 = arith.addf %95, %139 : vector<8x32xf32>
    %c0_46 = arith.constant 0 : index
    %c0_47 = arith.constant 0 : index
    %c0_48 = arith.constant 0 : index
    %141 = vector.load %arg14[%c0_46, %c0_47, %c0_48] : memref<1x8x32xf32, #tpu.memory_space<vmem>>, vector<1x8x32xf32>
    %142 = vector.shape_cast %141 : vector<1x8x32xf32> to vector<8x32xf32>
    %143 = vector.shape_cast %140 : vector<8x32xf32> to vector<1x8x32xf32>
    tpu.vector_store %arg14[%c0_46, %c0_47, %c0_48], %143 {strides = array<i32>} : memref<1x8x32xf32, #tpu.memory_space<vmem>>, vector<1x8x32xf32>,
    return
  }
  func.func @transform_0(%arg0: i32) -> (i32, i32, i32) {
    %c0_i32 = arith.constant 0 : i32
    %c0_i32_0 = arith.constant 0 : i32
    %c0_i32_1 = arith.constant 0 : i32
    return %arg0, %c0_i32, %c0_i32_0 : i32, i32, i32
  }
  func.func @transform_1(%arg0: i32) -> (i32, i32) {
    %c0_i32 = arith.constant 0 : i32
    %c0_i32_0 = arith.constant 0 : i32
    %c0_i32_1 = arith.constant 0 : i32
    return %c0_i32, %c0_i32_0 : i32, i32
  }
  func.func @transform_2(%arg0: i32) -> (i32, i32) {
    %c0_i32 = arith.constant 0 : i32
    %c0_i32_0 = arith.constant 0 : i32
    %c0_i32_1 = arith.constant 0 : i32
    return %c0_i32, %c0_i32_0 : i32, i32
  }
  func.func @transform_3(%arg0: i32) -> (i32, i32) {
    %c0_i32 = arith.constant 0 : i32
    %c0_i32_0 = arith.constant 0 : i32
    %c0_i32_1 = arith.constant 0 : i32
    return %c0_i32, %c0_i32_0 : i32, i32
  }
  func.func @transform_4(%arg0: i32) -> (i32, i32) {
    %c0_i32 = arith.constant 0 : i32
    %c0_i32_0 = arith.constant 0 : i32
    %c0_i32_1 = arith.constant 0 : i32
    return %c0_i32, %c0_i32_0 : i32, i32
  }
  func.func @transform_5(%arg0: i32) -> (i32, i32) {
    %c0_i32 = arith.constant 0 : i32
    %c0_i32_0 = arith.constant 0 : i32
    %c0_i32_1 = arith.constant 0 : i32
    return %c0_i32, %c0_i32_0 : i32, i32
  }
  func.func @transform_6(%arg0: i32) -> (i32, i32) {
    %c0_i32 = arith.constant 0 : i32
    %c0_i32_0 = arith.constant 0 : i32
    %c0_i32_1 = arith.constant 0 : i32
    return %c0_i32, %c0_i32_0 : i32, i32
  }
  func.func @transform_7(%arg0: i32) -> (i32, i32) {
    %c0_i32 = arith.constant 0 : i32
    %c0_i32_0 = arith.constant 0 : i32
    %c0_i32_1 = arith.constant 0 : i32
    return %c0_i32, %c0_i32_0 : i32, i32
  }
  func.func @transform_8(%arg0: i32) -> (i32, i32) {
    %c0_i32 = arith.constant 0 : i32
    %c0_i32_0 = arith.constant 0 : i32
    %c0_i32_1 = arith.constant 0 : i32
    return %c0_i32, %c0_i32_0 : i32, i32
  }
  func.func @transform_9(%arg0: i32) -> (i32, i32) {
    %c0_i32 = arith.constant 0 : i32
    %c0_i32_0 = arith.constant 0 : i32
    %c0_i32_1 = arith.constant 0 : i32
    return %c0_i32, %c0_i32_0 : i32, i32
  }
  func.func @transform_10(%arg0: i32) -> (i32, i32) {
    %c0_i32 = arith.constant 0 : i32
    %c0_i32_0 = arith.constant 0 : i32
    %c0_i32_1 = arith.constant 0 : i32
    return %c0_i32, %c0_i32_0 : i32, i32
  }
  func.func @transform_11(%arg0: i32) -> (i32, i32) {
    %c0_i32 = arith.constant 0 : i32
    %c0_i32_0 = arith.constant 0 : i32
    %c0_i32_1 = arith.constant 0 : i32
    return %c0_i32, %c0_i32_0 : i32, i32
  }
  func.func @transform_12(%arg0: i32) -> (i32, i32) {
    %c0_i32 = arith.constant 0 : i32
    %c0_i32_0 = arith.constant 0 : i32
    %c0_i32_1 = arith.constant 0 : i32
    return %c0_i32, %c0_i32_0 : i32, i32
  }
  func.func @transform_13(%arg0: i32) -> (i32, i32, i32) {
    %c0_i32 = arith.constant 0 : i32
    %c0_i32_0 = arith.constant 0 : i32
    %c0_i32_1 = arith.constant 0 : i32
    return %arg0, %c0_i32, %c0_i32_0 : i32, i32, i32
  }
}

module attributes {stable_mosaic.version = 11 : i64} {
  func.func @kernel(%arg0: i32, %arg1: memref<1x8x32xf32, #tpu.memory_space<vmem>>, %arg2: memref<1x32xf32, #tpu.memory_space<vmem>>, %arg3: memref<1x32xf32, #tpu.memory_space<vmem>>, %arg4: memref<32x96xbf16, #tpu.memory_space<vmem>>, %arg5: memref<1x96xf32, #tpu.memory_space<vmem>>, %arg6: memref<32x32xbf16, #tpu.memory_space<vmem>>, %arg7: memref<1x32xf32, #tpu.memory_space<vmem>>, %arg8: memref<1x32xf32, #tpu.memory_space<vmem>>, %arg9: memref<1x32xf32, #tpu.memory_space<vmem>>, %arg10: memref<32x128xbf16, #tpu.memory_space<vmem>>, %arg11: memref<1x128xf32, #tpu.memory_space<vmem>>, %arg12: memref<128x32xbf16, #tpu.memory_space<vmem>>, %arg13: memref<1x32xf32, #tpu.memory_space<vmem>>, %arg14: memref<1x8x32xf32, #tpu.memory_space<vmem>>) attributes {dimension_semantics = [#tpu.dimension_semantics<parallel>], iteration_bounds = array<i64: 2>, scalar_prefetch = 0 : i64, scratch_operands = 0 : i64, tpu.core_type = #tpu.core_type<tc>, window_params = [{transform_indices = @transform_0, window_bounds = array<i64: 1, 8, 32>}, {pipeline_mode = #tpu.pipeline_mode<synchronous>, transform_indices = @transform_1, window_bounds = array<i64: 1, 32>}, {pipeline_mode = #tpu.pipeline_mode<synchronous>, transform_indices = @transform_2, window_bounds = array<i64: 1, 32>}, {pipeline_mode = #tpu.pipeline_mode<synchronous>, transform_indices = @transform_3, window_bounds = array<i64: 32, 96>}, {pipeline_mode = #tpu.pipeline_mode<synchronous>, transform_indices = @transform_4, window_bounds = array<i64: 1, 96>}, {pipeline_mode = #tpu.pipeline_mode<synchronous>, transform_indices = @transform_5, window_bounds = array<i64: 32, 32>}, {pipeline_mode = #tpu.pipeline_mode<synchronous>, transform_indices = @transform_6, window_bounds = array<i64: 1, 32>}, {pipeline_mode = #tpu.pipeline_mode<synchronous>, transform_indices = @transform_7, window_bounds = array<i64: 1, 32>}, {pipeline_mode = #tpu.pipeline_mode<synchronous>, transform_indices = @transform_8, window_bounds = array<i64: 1, 32>}, {pipeline_mode = #tpu.pipeline_mode<synchronous>, transform_indices = @transform_9, window_bounds = array<i64: 32, 128>}, {pipeline_mode = #tpu.pipeline_mode<synchronous>, transform_indices = @transform_10, window_bounds = array<i64: 1, 128>}, {pipeline_mode = #tpu.pipeline_mode<synchronous>, transform_indices = @transform_11, window_bounds = array<i64: 128, 32>}, {pipeline_mode = #tpu.pipeline_mode<synchronous>, transform_indices = @transform_12, window_bounds = array<i64: 1, 32>}, {transform_indices = @transform_13, window_bounds = array<i64: 1, 8, 32>}]} {
    %c0 = arith.constant 0 : index
    %c0_0 = arith.constant 0 : index
    %c0_1 = arith.constant 0 : index
    %0 = vector.load %arg1[%c0, %c0_0, %c0_1] : memref<1x8x32xf32, #tpu.memory_space<vmem>>, vector<1x8x32xf32>
    %1 = vector.shape_cast %0 : vector<1x8x32xf32> to vector<8x32xf32>
    %cst = arith.constant dense<0.000000e+00> : vector<8xf32>
    %2 = vector.multi_reduction <add>, %1, %cst [1] : vector<8x32xf32> to vector<8xf32>
    %3 = vector.shape_cast %2 : vector<8xf32> to vector<8x1xf32>
    %cst_2 = arith.constant 3.200000e+01 : f32
    %4 = vector.broadcast %cst_2 : f32 to vector<8x1xf32>
    %5 = arith.divf %3, %4 : vector<8x1xf32>
    %6 = vector.broadcast %5 : vector<8x1xf32> to vector<8x32xf32>
    %7 = arith.subf %1, %6 : vector<8x32xf32>
    %8 = arith.mulf %7, %7 : vector<8x32xf32>
    %cst_3 = arith.constant dense<0.000000e+00> : vector<8xf32>
    %9 = vector.multi_reduction <add>, %8, %cst_3 [1] : vector<8x32xf32> to vector<8xf32>
    %10 = vector.shape_cast %9 : vector<8xf32> to vector<8x1xf32>
    %cst_4 = arith.constant 3.200000e+01 : f32
    %11 = vector.broadcast %cst_4 : f32 to vector<8x1xf32>
    %12 = arith.divf %10, %11 : vector<8x1xf32>
    %13 = vector.broadcast %5 : vector<8x1xf32> to vector<8x32xf32>
    %14 = arith.subf %1, %13 : vector<8x32xf32>
    %cst_5 = arith.constant 9.99999974E-6 : f32
    %15 = vector.broadcast %cst_5 : f32 to vector<8x1xf32>
    %16 = arith.addf %12, %15 : vector<8x1xf32>
    %17 = math.rsqrt %16 : vector<8x1xf32>
    %18 = vector.broadcast %17 : vector<8x1xf32> to vector<8x32xf32>
    %19 = arith.mulf %14, %18 : vector<8x32xf32>
    %c0_6 = arith.constant 0 : index
    %c0_7 = arith.constant 0 : index
    %20 = vector.load %arg2[%c0_6, %c0_7] : memref<1x32xf32, #tpu.memory_space<vmem>>, vector<1x32xf32>
    %21 = vector.broadcast %20 : vector<1x32xf32> to vector<8x32xf32>
    %22 = arith.mulf %19, %21 : vector<8x32xf32>
    %c0_8 = arith.constant 0 : index
    %c0_9 = arith.constant 0 : index
    %23 = vector.load %arg3[%c0_8, %c0_9] : memref<1x32xf32, #tpu.memory_space<vmem>>, vector<1x32xf32>
    %24 = vector.broadcast %23 : vector<1x32xf32> to vector<8x32xf32>
    %25 = arith.addf %22, %24 : vector<8x32xf32>
    %26 = arith.truncf %25 : vector<8x32xf32> to vector<8x32xbf16>
    %c0_10 = arith.constant 0 : index
    %c0_11 = arith.constant 0 : index
    %27 = vector.load %arg4[%c0_10, %c0_11] : memref<32x96xbf16, #tpu.memory_space<vmem>>, vector<32x96xbf16>
    %cst_12 = arith.constant dense<0.000000e+00> : vector<8x96xf32>
    %28 = tpu.matmul %26, %27, %cst_12 {dimension_numbers = #tpu.dot_dimension_numbers<[1], [0], [0], [1], [0, 0, 1, 1], [], []>} : vector<8x32xbf16>, vector<32x96xbf16>, vector<8x96xf32> -> vector<8x96xf32>
    %c0_13 = arith.constant 0 : index
    %c0_14 = arith.constant 0 : index
    %29 = vector.load %arg5[%c0_13, %c0_14] : memref<1x96xf32, #tpu.memory_space<vmem>>, vector<1x96xf32>
    %30 = vector.broadcast %29 : vector<1x96xf32> to vector<8x96xf32>
    %31 = arith.addf %28, %30 : vector<8x96xf32>
    %32 = vector.extract_strided_slice %31 {offsets = [0, 0], sizes = [8, 32], strides = [1, 1]} : vector<8x96xf32> to vector<8x32xf32>
    %cst_15 = arith.constant 0.353553385 : f32
    %33 = vector.broadcast %cst_15 : f32 to vector<8x32xf32>
    %34 = arith.mulf %32, %33 : vector<8x32xf32>
    %35 = vector.extract_strided_slice %31 {offsets = [0, 32], sizes = [8, 32], strides = [1, 1]} : vector<8x96xf32> to vector<8x32xf32>
    %36 = vector.extract_strided_slice %31 {offsets = [0, 64], sizes = [8, 32], strides = [1, 1]} : vector<8x96xf32> to vector<8x32xf32>
    %37 = vector.extract_strided_slice %34 {offsets = [0, 0], sizes = [8, 8], strides = [1, 1]} : vector<8x32xf32> to vector<8x8xf32>
    %38 = vector.extract_strided_slice %34 {offsets = [0, 8], sizes = [8, 8], strides = [1, 1]} : vector<8x32xf32> to vector<8x8xf32>
    %39 = vector.extract_strided_slice %34 {offsets = [0, 16], sizes = [8, 8], strides = [1, 1]} : vector<8x32xf32> to vector<8x8xf32>
    %40 = vector.extract_strided_slice %34 {offsets = [0, 24], sizes = [8, 8], strides = [1, 1]} : vector<8x32xf32> to vector<8x8xf32>
    %41 = vector.shape_cast %37 : vector<8x8xf32> to vector<1x8x8xf32>
    %42 = vector.shape_cast %38 : vector<8x8xf32> to vector<1x8x8xf32>
    %43 = vector.shape_cast %39 : vector<8x8xf32> to vector<1x8x8xf32>
    %44 = vector.shape_cast %40 : vector<8x8xf32> to vector<1x8x8xf32>
    %45 = tpu.concatenate %41, %42, %43, %44 in 0 : vector<1x8x8xf32>, vector<1x8x8xf32>, vector<1x8x8xf32>, vector<1x8x8xf32> -> vector<4x8x8xf32>
    %46 = arith.truncf %45 : vector<4x8x8xf32> to vector<4x8x8xbf16>
    %47 = vector.extract_strided_slice %35 {offsets = [0, 0], sizes = [8, 8], strides = [1, 1]} : vector<8x32xf32> to vector<8x8xf32>
    %48 = vector.extract_strided_slice %35 {offsets = [0, 8], sizes = [8, 8], strides = [1, 1]} : vector<8x32xf32> to vector<8x8xf32>
    %49 = vector.extract_strided_slice %35 {offsets = [0, 16], sizes = [8, 8], strides = [1, 1]} : vector<8x32xf32> to vector<8x8xf32>
    %50 = vector.extract_strided_slice %35 {offsets = [0, 24], sizes = [8, 8], strides = [1, 1]} : vector<8x32xf32> to vector<8x8xf32>
    %51 = vector.shape_cast %47 : vector<8x8xf32> to vector<1x8x8xf32>
    %52 = vector.shape_cast %48 : vector<8x8xf32> to vector<1x8x8xf32>
    %53 = vector.shape_cast %49 : vector<8x8xf32> to vector<1x8x8xf32>
    %54 = vector.shape_cast %50 : vector<8x8xf32> to vector<1x8x8xf32>
    %55 = tpu.concatenate %51, %52, %53, %54 in 0 : vector<1x8x8xf32>, vector<1x8x8xf32>, vector<1x8x8xf32>, vector<1x8x8xf32> -> vector<4x8x8xf32>
    %56 = arith.truncf %55 : vector<4x8x8xf32> to vector<4x8x8xbf16>
    %57 = vector.extract_strided_slice %36 {offsets = [0, 0], sizes = [8, 8], strides = [1, 1]} : vector<8x32xf32> to vector<8x8xf32>
    %58 = vector.extract_strided_slice %36 {offsets = [0, 8], sizes = [8, 8], strides = [1, 1]} : vector<8x32xf32> to vector<8x8xf32>
    %59 = vector.extract_strided_slice %36 {offsets = [0, 16], sizes = [8, 8], strides = [1, 1]} : vector<8x32xf32> to vector<8x8xf32>
    %60 = vector.extract_strided_slice %36 {offsets = [0, 24], sizes = [8, 8], strides = [1, 1]} : vector<8x32xf32> to vector<8x8xf32>
    %61 = vector.shape_cast %57 : vector<8x8xf32> to vector<1x8x8xf32>
    %62 = vector.shape_cast %58 : vector<8x8xf32> to vector<1x8x8xf32>
    %63 = vector.shape_cast %59 : vector<8x8xf32> to vector<1x8x8xf32>
    %64 = vector.shape_cast %60 : vector<8x8xf32> to vector<1x8x8xf32>
    %65 = tpu.concatenate %61, %62, %63, %64 in 0 : vector<1x8x8xf32>, vector<1x8x8xf32>, vector<1x8x8xf32>, vector<1x8x8xf32> -> vector<4x8x8xf32>
    %66 = arith.truncf %65 : vector<4x8x8xf32> to vector<4x8x8xbf16>
    "tpu.trace_start"() <{level = 10 : i32, message = "hqd,hkd->hqk"}> : () -> ()
    %cst_16 = arith.constant dense<0.000000e+00> : vector<4x8x8xf32>
    %67 = tpu.matmul %46, %56, %cst_16 {dimension_numbers = #tpu.dot_dimension_numbers<[2], [2], [1], [1], [0, 0, 0, 1, 1, 1], [0], [0]>} : vector<4x8x8xbf16>, vector<4x8x8xbf16>, vector<4x8x8xf32> -> vector<4x8x8xf32>
    "tpu.trace_stop"() : () -> ()
    %cst_17 = arith.constant dense<0xFF800000> : vector<4x8xf32>
    %68 = vector.multi_reduction <maximumf>, %67, %cst_17 [2] : vector<4x8x8xf32> to vector<4x8xf32>
    %69 = vector.shape_cast %68 : vector<4x8xf32> to vector<4x8x1xf32>
    %70 = vector.broadcast %69 : vector<4x8x1xf32> to vector<4x8x8xf32>
    %71 = arith.subf %67, %70 : vector<4x8x8xf32>
    %72 = math.exp %71 : vector<4x8x8xf32>
    %cst_18 = arith.constant dense<0.000000e+00> : vector<4x8xf32>
    %73 = vector.multi_reduction <add>, %72, %cst_18 [2] : vector<4x8x8xf32> to vector<4x8xf32>
    %74 = vector.shape_cast %73 : vector<4x8xf32> to vector<4x8x1xf32>
    %75 = tpu.reciprocal %74 {approx = true} : vector<4x8x1xf32> -> vector<4x8x1xf32>
    %76 = arith.truncf %72 : vector<4x8x8xf32> to vector<4x8x8xbf16>
    "tpu.trace_start"() <{level = 10 : i32, message = "hqk,hkd->hqd"}> : () -> ()
    %cst_19 = arith.constant dense<0.000000e+00> : vector<4x8x8xf32>
    %77 = tpu.matmul %76, %66, %cst_19 {dimension_numbers = #tpu.dot_dimension_numbers<[2], [1], [1], [2], [0, 0, 0, 1, 1, 2], [0], [0]>} : vector<4x8x8xbf16>, vector<4x8x8xbf16>, vector<4x8x8xf32> -> vector<4x8x8xf32>
    "tpu.trace_stop"() : () -> ()
    %78 = vector.broadcast %75 : vector<4x8x1xf32> to vector<4x8x8xf32>
    %79 = arith.mulf %77, %78 : vector<4x8x8xf32>
    %80 = vector.extract_strided_slice %79 {offsets = [0, 0, 0], sizes = [1, 8, 8], strides = [1, 1, 1]} : vector<4x8x8xf32> to vector<1x8x8xf32>
    %81 = vector.shape_cast %80 : vector<1x8x8xf32> to vector<8x8xf32>
    %82 = vector.extract_strided_slice %79 {offsets = [1, 0, 0], sizes = [1, 8, 8], strides = [1, 1, 1]} : vector<4x8x8xf32> to vector<1x8x8xf32>
    %83 = vector.shape_cast %82 : vector<1x8x8xf32> to vector<8x8xf32>
    %84 = vector.extract_strided_slice %79 {offsets = [2, 0, 0], sizes = [1, 8, 8], strides = [1, 1, 1]} : vector<4x8x8xf32> to vector<1x8x8xf32>
    %85 = vector.shape_cast %84 : vector<1x8x8xf32> to vector<8x8xf32>
    %86 = vector.extract_strided_slice %79 {offsets = [3, 0, 0], sizes = [1, 8, 8], strides = [1, 1, 1]} : vector<4x8x8xf32> to vector<1x8x8xf32>
    %87 = vector.shape_cast %86 : vector<1x8x8xf32> to vector<8x8xf32>
    %88 = tpu.concatenate %81, %83, %85, %87 in 1 : vector<8x8xf32>, vector<8x8xf32>, vector<8x8xf32>, vector<8x8xf32> -> vector<8x32xf32>
    %89 = arith.truncf %88 : vector<8x32xf32> to vector<8x32xbf16>
    %c0_20 = arith.constant 0 : index
    %c0_21 = arith.constant 0 : index
    %90 = vector.load %arg6[%c0_20, %c0_21] : memref<32x32xbf16, #tpu.memory_space<vmem>>, vector<32x32xbf16>
    %cst_22 = arith.constant dense<0.000000e+00> : vector<8x32xf32>
    %91 = tpu.matmul %89, %90, %cst_22 {dimension_numbers = #tpu.dot_dimension_numbers<[1], [0], [0], [1], [0, 0, 1, 1], [], []>} : vector<8x32xbf16>, vector<32x32xbf16>, vector<8x32xf32> -> vector<8x32xf32>
    %c0_23 = arith.constant 0 : index
    %c0_24 = arith.constant 0 : index
    %92 = vector.load %arg7[%c0_23, %c0_24] : memref<1x32xf32, #tpu.memory_space<vmem>>, vector<1x32xf32>
    %93 = vector.broadcast %92 : vector<1x32xf32> to vector<8x32xf32>
    %94 = arith.addf %91, %93 : vector<8x32xf32>
    %95 = arith.addf %1, %94 : vector<8x32xf32>
    %cst_25 = arith.constant dense<0.000000e+00> : vector<8xf32>
    %96 = vector.multi_reduction <add>, %95, %cst_25 [1] : vector<8x32xf32> to vector<8xf32>
    %97 = vector.shape_cast %96 : vector<8xf32> to vector<8x1xf32>
    %cst_26 = arith.constant 3.200000e+01 : f32
    %98 = vector.broadcast %cst_26 : f32 to vector<8x1xf32>
    %99 = arith.divf %97, %98 : vector<8x1xf32>
    %100 = vector.broadcast %99 : vector<8x1xf32> to vector<8x32xf32>
    %101 = arith.subf %95, %100 : vector<8x32xf32>
    %102 = arith.mulf %101, %101 : vector<8x32xf32>
    %cst_27 = arith.constant dense<0.000000e+00> : vector<8xf32>
    %103 = vector.multi_reduction <add>, %102, %cst_27 [1] : vector<8x32xf32> to vector<8xf32>
    %104 = vector.shape_cast %103 : vector<8xf32> to vector<8x1xf32>
    %cst_28 = arith.constant 3.200000e+01 : f32
    %105 = vector.broadcast %cst_28 : f32 to vector<8x1xf32>
    %106 = arith.divf %104, %105 : vector<8x1xf32>
    %107 = vector.broadcast %99 : vector<8x1xf32> to vector<8x32xf32>
    %108 = arith.subf %95, %107 : vector<8x32xf32>
    %cst_29 = arith.constant 9.99999974E-6 : f32
    %109 = vector.broadcast %cst_29 : f32 to vector<8x1xf32>
    %110 = arith.addf %106, %109 : vector<8x1xf32>
    %111 = math.rsqrt %110 : vector<8x1xf32>
    %112 = vector.broadcast %111 : vector<8x1xf32> to vector<8x32xf32>
    %113 = arith.mulf %108, %112 : vector<8x32xf32>
    %c0_30 = arith.constant 0 : index
    %c0_31 = arith.constant 0 : index
    %114 = vector.load %arg8[%c0_30, %c0_31] : memref<1x32xf32, #tpu.memory_space<vmem>>, vector<1x32xf32>
    %115 = vector.broadcast %114 : vector<1x32xf32> to vector<8x32xf32>
    %116 = arith.mulf %113, %115 : vector<8x32xf32>
    %c0_32 = arith.constant 0 : index
    %c0_33 = arith.constant 0 : index
    %117 = vector.load %arg9[%c0_32, %c0_33] : memref<1x32xf32, #tpu.memory_space<vmem>>, vector<1x32xf32>
    %118 = vector.broadcast %117 : vector<1x32xf32> to vector<8x32xf32>
    %119 = arith.addf %116, %118 : vector<8x32xf32>
    %120 = arith.truncf %119 : vector<8x32xf32> to vector<8x32xbf16>
    %c0_34 = arith.constant 0 : index
    %c0_35 = arith.constant 0 : index
    %121 = vector.load %arg10[%c0_34, %c0_35] : memref<32x128xbf16, #tpu.memory_space<vmem>>, vector<32x128xbf16>
    %cst_36 = arith.constant dense<0.000000e+00> : vector<8x128xf32>
    %122 = tpu.matmul %120, %121, %cst_36 {dimension_numbers = #tpu.dot_dimension_numbers<[1], [0], [0], [1], [0, 0, 1, 1], [], []>} : vector<8x32xbf16>, vector<32x128xbf16>, vector<8x128xf32> -> vector<8x128xf32>
    %c0_37 = arith.constant 0 : index
    %c0_38 = arith.constant 0 : index
    %123 = vector.load %arg11[%c0_37, %c0_38] : memref<1x128xf32, #tpu.memory_space<vmem>>, vector<1x128xf32>
    %124 = vector.broadcast %123 : vector<1x128xf32> to vector<8x128xf32>
    %125 = arith.addf %122, %124 : vector<8x128xf32>
    %cst_39 = arith.constant 1.702000e+00 : f32
    %126 = vector.broadcast %cst_39 : f32 to vector<8x128xf32>
    %127 = arith.mulf %126, %125 : vector<8x128xf32>
    %128 = arith.negf %127 : vector<8x128xf32>
    %129 = math.exp %128 : vector<8x128xf32>
    %cst_40 = arith.constant 1.000000e+00 : f32
    %130 = vector.broadcast %cst_40 : f32 to vector<8x128xf32>
    %131 = arith.addf %130, %129 : vector<8x128xf32>
    %132 = arith.divf %130, %131 : vector<8x128xf32>
    %133 = arith.mulf %125, %132 : vector<8x128xf32>
    %134 = arith.truncf %133 : vector<8x128xf32> to vector<8x128xbf16>
    %c0_41 = arith.constant 0 : index
    %c0_42 = arith.constant 0 : index
    %135 = vector.load %arg12[%c0_41, %c0_42] : memref<128x32xbf16, #tpu.memory_space<vmem>>, vector<128x32xbf16>
    %cst_43 = arith.constant dense<0.000000e+00> : vector<8x32xf32>
    %136 = tpu.matmul %134, %135, %cst_43 {dimension_numbers = #tpu.dot_dimension_numbers<[1], [0], [0], [1], [0, 0, 1, 1], [], []>} : vector<8x128xbf16>, vector<128x32xbf16>, vector<8x32xf32> -> vector<8x32xf32>
    %c0_44 = arith.constant 0 : index
    %c0_45 = arith.constant 0 : index
    %137 = vector.load %arg13[%c0_44, %c0_45] : memref<1x32xf32, #tpu.memory_space<vmem>>, vector<1x32xf32>
    %138 = vector.broadcast %137 : vector<1x32xf32> to vector<8x32xf32>
    %139 = arith.addf %136, %138 : vector<8x32xf32>
    %140 = arith.addf %95, %139 : vector<8x32xf32>
    %c0_46 = arith.constant 0 : index
    %c0_47 = arith.constant 0 : index
    %c0_48 = arith.constant 0 : index
    %141 = vector.load %arg14[%c0_46, %c0_47, %c0_48] : memref<1x8x32xf32, #tpu.memory_space<vmem>>, vector<1x8x32xf32>
    %142 = vector.shape_cast %141 : vector<1x8x32xf32> to vector<8x32xf32>
    %143 = vector.shape_cast %140 : vector<8x32xf32> to vector<1x8x32xf32>
    tpu.vector_store %arg14[%c0_46, %c0_47, %c0_48], %143 {strides = array<i32>} : memref<1x8x32xf32, #tpu.memory_space<vmem>>, vector<1x8x32xf32>,
    return
  }
  func.func @transform_0(%arg0: i32) -> (i32, i32, i32) {
    %c0_i32 = arith.constant 0 : i32
    %c0_i32_0 = arith.constant 0 : i32
    %c0_i32_1 = arith.constant 0 : i32
    return %arg0, %c0_i32, %c0_i32_0 : i32, i32, i32
  }
  func.func @transform_1(%arg0: i32) -> (i32, i32) {
    %c0_i32 = arith.constant 0 : i32
    %c0_i32_0 = arith.constant 0 : i32
    %c0_i32_1 = arith.constant 0 : i32
    return %c0_i32, %c0_i32_0 : i32, i32
  }
  func.func @transform_2(%arg0: i32) -> (i32, i32) {
    %c0_i32 = arith.constant 0 : i32
    %c0_i32_0 = arith.constant 0 : i32
    %c0_i32_1 = arith.constant 0 : i32
    return %c0_i32, %c0_i32_0 : i32, i32
  }
  func.func @transform_3(%arg0: i32) -> (i32, i32) {
    %c0_i32 = arith.constant 0 : i32
    %c0_i32_0 = arith.constant 0 : i32
    %c0_i32_1 = arith.constant 0 : i32
    return %c0_i32, %c0_i32_0 : i32, i32
  }
  func.func @transform_4(%arg0: i32) -> (i32, i32) {
    %c0_i32 = arith.constant 0 : i32
    %c0_i32_0 = arith.constant 0 : i32
    %c0_i32_1 = arith.constant 0 : i32
    return %c0_i32, %c0_i32_0 : i32, i32
  }
  func.func @transform_5(%arg0: i32) -> (i32, i32) {
    %c0_i32 = arith.constant 0 : i32
    %c0_i32_0 = arith.constant 0 : i32
    %c0_i32_1 = arith.constant 0 : i32
    return %c0_i32, %c0_i32_0 : i32, i32
  }
  func.func @transform_6(%arg0: i32) -> (i32, i32) {
    %c0_i32 = arith.constant 0 : i32
    %c0_i32_0 = arith.constant 0 : i32
    %c0_i32_1 = arith.constant 0 : i32
    return %c0_i32, %c0_i32_0 : i32, i32
  }
  func.func @transform_7(%arg0: i32) -> (i32, i32) {
    %c0_i32 = arith.constant 0 : i32
    %c0_i32_0 = arith.constant 0 : i32
    %c0_i32_1 = arith.constant 0 : i32
    return %c0_i32, %c0_i32_0 : i32, i32
  }
  func.func @transform_8(%arg0: i32) -> (i32, i32) {
    %c0_i32 = arith.constant 0 : i32
    %c0_i32_0 = arith.constant 0 : i32
    %c0_i32_1 = arith.constant 0 : i32
    return %c0_i32, %c0_i32_0 : i32, i32
  }
  func.func @transform_9(%arg0: i32) -> (i32, i32) {
    %c0_i32 = arith.constant 0 : i32
    %c0_i32_0 = arith.constant 0 : i32
    %c0_i32_1 = arith.constant 0 : i32
    return %c0_i32, %c0_i32_0 : i32, i32
  }
  func.func @transform_10(%arg0: i32) -> (i32, i32) {
    %c0_i32 = arith.constant 0 : i32
    %c0_i32_0 = arith.constant 0 : i32
    %c0_i32_1 = arith.constant 0 : i32
    return %c0_i32, %c0_i32_0 : i32, i32
  }
  func.func @transform_11(%arg0: i32) -> (i32, i32) {
    %c0_i32 = arith.constant 0 : i32
    %c0_i32_0 = arith.constant 0 : i32
    %c0_i32_1 = arith.constant 0 : i32
    return %c0_i32, %c0_i32_0 : i32, i32
  }
  func.func @transform_12(%arg0: i32) -> (i32, i32) {
    %c0_i32 = arith.constant 0 : i32
    %c0_i32_0 = arith.constant 0 : i32
    %c0_i32_1 = arith.constant 0 : i32
    return %c0_i32, %c0_i32_0 : i32, i32
  }
  func.func @transform_13(%arg0: i32) -> (i32, i32, i32) {
    %c0_i32 = arith.constant 0 : i32
    %c0_i32_0 = arith.constant 0 : i32
    %c0_i32_1 = arith.constant 0 : i32
    return %arg0, %c0_i32, %c0_i32_0 : i32, i32, i32
  }
}

</mosaic_0001>

<bundles_post_ra>
// kernel: tpu_custom_call.1
= control target key start
LH: loop header
LB: loop body
LE: loop exit
PB: predicated region body
PF: predicated region fallthrough
CT: control target
= control target key end

     0   :  { %s2048_s0 = inlined_call_operand.vmem [shape: f32[2,8,32], index: 0, kind: input, shape index: {}]   ;;  %s2049_s1 = inlined_call_operand.vmem [shape: f32[1,32], index: 1, kind: input, shape index: {}]   ;;  %s2050_s2 = inlined_call_operand.vmem [shape: f32[1,32], index: 2, kind: input, shape index: {}]   ;;  %s2051_s3 = inlined_call_operand.vmem [shape: bf16[32,96], index: 3, kind: input, shape index: {}]   ;;  %s2052_s4 = inlined_call_operand.vmem [shape: f32[1,96], index: 4, kind: input, shape index: {}]   ;;  %s2053_s5 = inlined_call_operand.vmem [shape: bf16[32,32], index: 5, kind: input, shape index: {}]   ;;  %s2054_s6 = inlined_call_operand.vmem [shape: f32[1,32], index: 6, kind: input, shape index: {}]   ;;  %s2055_s7 = inlined_call_operand.vmem [shape: f32[1,32], index: 7, kind: input, shape index: {}]   ;;  %s2056_s8 = inlined_call_operand.vmem [shape: f32[1,32], index: 8, kind: input, shape index: {}]   ;;  %s2057_s9 = inlined_call_operand.vmem [shape: bf16[32,128], index: 9, kind: input, shape index: {}]   ;;  %s2058_s10 = inlined_call_operand.vmem [shape: f32[1,128], index: 10, kind: input, shape index: {}]   ;;  %s2059_s11 = inlined_call_operand.vmem [shape: bf16[128,32], index: 11, kind: input, shape index: {}]   ;;  %s2060_s12 = inlined_call_operand.vmem [shape: f32[1,32], index: 12, kind: input, shape index: {}]   ;;  %s2061_s13 = inlined_call_operand.hbm [shape: f32[2,8,32], index: 13, kind: output, shape index: {}]  }
   0x1   :  { %2062 = sst [smem:[#allocation5_spill]] %s2048_s0 }
   0x2   :  { %2063 = sst [smem:[#allocation6_spill]] %s2049_s1 }
   0x3   :  { %2064 = sst [smem:[#allocation7_spill]] %s2050_s2 }
   0x4   :  { %18 = vsyncpa [#allocation3], 0 }
   0x5   :  { %20 = vsyncpa [#allocation3 + $0x1], 0  ;;  %s1781_s25 = smov 0   ;;  %s1783_s26 = smov 0  }
   0x6   :  { %s1785_s27 = smov 0   ;;  %s1787_s28 = smov 0  }
   0x7 LB: > { %s1802_s29 = sadd.s32 4294967295, %s1698_s28   ;;  %s1379_s30 = sadd.s32 4294967294, %s1698_s28   ;;  %s1698_s28 = sphi %s1787_s28, %s2073_s28   ;;  %s1694_s27 = sphi %s1785_s27, %s2072_s27   ;;  %s1690_s26 = sphi %s1783_s26, %s2071_s26   ;;  %s1686_s25 = sphi %s1781_s25, %s2070_s25  }
   0x8   : > { %s1806_s14 = sadd.s32 1, %s1698_s28   ;;  %s311_s15 = sadd.s32 1, %s1694_s27 }
   0x9   : > { %s308_s16 = ssub.s32 %s1698_s28, %s1806_s14  ;;  %p321_p0 = scmp.ne.s32.totalorder %s1694_s27, %s1690_s26 }
   0xa   : > { %p309_p1 = scmp.eq.s32.totalorder %s308_s16, 0  ;;  %p322_p2 = scmp.eq.s32.totalorder %s1802_s29, 1 }
   0xb   : > { %p327_p3 = scmp.ne.s32.totalorder %s1690_s26, %s1686_s25  ;;  %p328_p4 = scmp.eq.s32.totalorder %s1379_s30, 1 }
   0xc   : > { %s1817_s17 = scalar_select %p309_p1, %s1694_s27, %s311_s15  }
   0xd   : > { %p1819_p5 = por %p322_p2, %p321_p0  ;;  %p1823_p6 = por %p328_p4, %p327_p3 }
   0xe   : > { %p1382_p7 = scmp.ge.s32.totalorder %s1698_s28, 1  ;;  %p389_p8 = scmp.lt.s32.totalorder %s1698_s28, 3 }
  0x10   : > { %p390_p9 = pnand %p1382_p7, %p389_p8 }
  0x11   : > { %p432_p10 = scmp.lt.s32.totalorder (!%p390_p9), %s1802_s29, 1  ;;  %vm438_vm0 = vcmask (!%p390_p9), 261120   ;;  %s2067_s0 = sld [smem:[#allocation5_spill]] (!%p390_p9)  ;;  %v1598_v7 = vld [vmem:[%s2051_s3] sm:$0xff] (!%p390_p9)   ;;  %v1700_v8 = vmov (!%p390_p9), 0.0   ;;  %vm1701_vm1 = vmmov (!%p390_p9), 0  }
  0x12   : > { %393 = sbr.rel (%p390_p9) target bundleno = 2520 (0x9d8), region = 72  ;;  %1457 = vmatprep.subr.bf16.mxu0 (!%p390_p9), %v1700_v8  ;;  %1461 = vmatprep.mubr.msk.bf16.mxu0 (!%p390_p9), %vm1701_vm1, %v1700_v8  ;;  %v1599_v9 = vld [vmem:[%s2051_s3 + $0x8] sm:$0xff] (!%p390_p9)   ;;  %s2068_s1 = sld [smem:[#allocation6_spill]] (!%p390_p9)  ;;  %v1387_v20 = vld [vmem:[%s2052_s4] ss:$0 sm:$0xff] (!%p390_p9)  ;;  %vm568_vm2 = vcmask (!%p390_p9), 64512  }
  0x13   : > { %1458 = vmatpush3.bf16.msra.mxu0 (!%p390_p9), %v1598_v7  ;;  %1477 = vmatprep.subr.bf16.mxu1 (!%p390_p9), %v1700_v8  ;;  %s2069_s2 = sld [smem:[#allocation7_spill]] (!%p390_p9)  ;;  %s1702_s16 = smov (!%p390_p9), 104   ;;  %vm811_vm3 = vcmask (!%p390_p9), 1043456   ;;  %vm1016_vm4 = vcmask (!%p390_p9), 130048   ;;  %vm1018_vm5 = vcmask (!%p390_p9), 195584  }
  0x14   : > { %1459 = vmatprep.subr.bf16.mxu0 (!%p390_p9), %v1700_v8  ;;  %1479 = vmatprep.mubr.msk.bf16.mxu1 (!%p390_p9), %vm1701_vm1, %v1700_v8  ;;  %s1705_s22 = smov (!%p390_p9), 96   ;;  %s1706_s23 = smov (!%p390_p9), 64  }
  0x17   : > { %1460 = vmatpush3.bf16.msra.mxu0 (!%p390_p9), %v1599_v9 }
  0x18   : > { %1465 = vmatprep.subr.bf16.mxu0 (!%p390_p9), %v1700_v8  ;;  %v1385_v14 = vld [vmem:[%s2068_s1] ss:$0 sm:$0xff] (!%p390_p9) }
  0x19   : > { %s433_s20 = scalar_select %p432_p10, %s1802_s29, 1  ;;  %v1386_v16 = vld [vmem:[%s2069_s2] ss:$0 sm:$0xff] }
  0x1b   : > { %s1384_s21 = sshll.u32 %s433_s20, 3  ;;  %s1703_s20 = smov 120  }
  0x1c   : > { %s435_s24 = scalar_lea.vmem %s2067_s0, %s1384_s21  ;;  %s1704_s21 = smov 112  }
  0x1d   : > { %v1834_v0 = vld [vmem:[%s435_s24] sm:$0xff] }
  0x1e   : > { %v439_v1 = vsel %vm438_vm0, %v1834_v0, 0.0 }
  0x1f   : > { %440 = vadd.xlane.f32.xlu0 %v439_v1 }
  0xac   : > { %v441_v2 = vpop.xlane.xlu0 %440 }
  0xad   : > { %v443_v3 = vmul.f32 0.03125, %v441_v2 }
  0xaf   : > { %v444_v4 = vsub.f32 %v1834_v0, %v443_v3 }
  0xb1   : > { %v445_v5 = vmul.f32 %v444_v4, %v444_v4 }
  0xb3   : > { %v446_v6 = vsel %vm438_vm0, %v445_v5, 0.0 }
  0xb4   : > { %447 = vadd.xlane.f32.xlu0 %v446_v6 }
 0x141   : > { %v448_v10 = vpop.xlane.xlu0 %447 }
 0x142   : > { %v449_v11 = vmul.f32 0.03125, %v448_v10 }
 0x144   : > { %v450_v12 = vadd.f32 1e-05, %v449_v11 }
 0x146   : > { %1612 = vrsqrt.f32 %v450_v12 }
 0x150   : > { %v1613_v13 = vpop.eup %1612 }
 0x151   : > { %v452_v15 = vmul.f32 %v1613_v13, %v444_v4 }
 0x153   : > { %v460_v17 = vmul.f32 %v1385_v14, %v452_v15 }
 0x155   : > { %v468_v18 = vadd.f32 %v1386_v16, %v460_v17 }
 0x157   : > { %v469_v19 = vpack.c.bf16 %v468_v18, %v468_v18 }
 0x159   : > { %1462 = vmatmul.mubr.msk.bf16.vlgmr.msra.gmra.mrb[0].mxu0 %vm438_vm0, %v469_v19 }
 0x15a   : > { %1467 = vmatprep.mubr.msk.bf16.mxu0 %vm1701_vm1, %v1700_v8 }
 0x22c   : > { %v530_v21 = vpop.f32.mrb[0].mxu0 }
 0x22d   : > { %v531_v22 = vadd.f32 %v1387_v20, %v530_v21  ;;  %v1463_v23 = vpop.f32.mrb[1].mxu0 }
 0x22e   : > { %v533_v24 = vpop.f32.mrb[2].mxu0 }
 0x22f   : > { %558 = vrot.lane.b32.xlu0 %v531_v22, %s1702_s16  ;;  %552 = vrot.lane.b32.xlu1 %v531_v22, %s1703_s20  ;;  %v1464_v25 = vpop.f32.mrb[3].mxu0  ;;  %v536_v26 = vmul.f32 0.35355338, %v531_v22  ;;  %v561_v27 = vpack.c.bf16 %v531_v22, %v531_v22 }
 0x231   : > { %v547_v36 = vpack.c.bf16 %v536_v26, %v536_v26 }
 0x233   : > { %555 = vrot.lane.b32.xlu1 %v531_v22, %s1704_s21  ;;  %544 = vrot.lane.b32.xlu0 %v536_v26, %s1702_s16  ;;  %s429_s16 = sand.u32 1, %s1690_s26  }
 0x237   : > { %566 = vrot.lane.b32.xlu1 %v561_v27, %s1705_s22  ;;  %806 = vrot.lane.b32.xlu0 %v561_v27, %s1706_s23 }
 0x23b   : > { %538 = vrot.lane.b32.xlu1 %v536_v26, %s1703_s20  ;;  %s1707_s20 = smov 8  }
 0x2a1   : > { %v553_v28 = vpop.permute.xlu1 %552  ;;  %v559_v32 = vpop.permute.xlu0 %558 }
 0x2a2   : > { %v562_v29 = vpack.c.bf16 %v553_v28, %v553_v28  ;;  %v1870_v34 = vpack.c.bf16 %v559_v32, %v559_v32 }
 0x2a4   : > { %616 = vrot.lane.b32.xlu1 %v562_v29, %s1705_s22 }
 0x2a5   : > { %v556_v30 = vpop.permute.xlu1 %555  ;;  %v545_v42 = vpop.permute.xlu0 %544 }
 0x2a6   : > { %v1867_v31 = vpack.c.bf16 %v556_v30, %v556_v30  ;;  %v550_v49 = vpack.c.bf16 %v545_v42, %v545_v42 }
 0x2a8   : > { %665 = vrot.lane.b32.xlu1 %v1867_v31, %s1705_s22 }
 0x2a9   : > { %v567_v33 = vpop.permute.xlu1 %566  ;;  %v807_v46 = vpop.permute.xlu0 %806 }
 0x2aa   : > { %v573_v35 = vsel %vm568_vm2, %v567_v33, 0  ;;  %v813_v50 = vsel %vm811_vm3, %v807_v46, 0  ;;  %v1601_v46 = vld [vmem:[%s2053_s5 + $0x8] sm:$0xff]  }
 0x2ab   : > { %1466 = vmatpush3.bf16.xpose.msra.mxu0 %v573_v35 }
 0x2ac   : > { %714 = vrot.lane.b32.xlu1 %v1870_v34, %s1705_s22  ;;  %1471 = vmatprep.subr.bf16.mxu0 %v1700_v8  ;;  %s1709_s22 = smov 24  }
 0x2ad   : > { %v539_v37 = vpop.permute.xlu1 %538 }
 0x2ae   : > { %v548_v43 = vpack.c.bf16 %v539_v37, %v539_v37 }
 0x2b0   : > { %541 = vrot.lane.b32.xlu1 %v536_v26, %s1704_s21  ;;  %s1708_s21 = smov 16  }
 0x2b2   : > { %1468 = vmatmul.mubr.msk.bf16.vlgmr.msra.gmra.mrb[4].mxu0 %vm568_vm2, %v547_v36 }
 0x2b3   : > { %1473 = vmatprep.mubr.msk.bf16.mxu0 %vm1701_vm1, %v1700_v8 }
 0x2b4   : > { %855 = vrot.lane.b32.xlu1 %v562_v29, %s1706_s23 }
 0x316   : > { %v617_v38 = vpop.permute.xlu1 %616 }
 0x317   : > { %v622_v39 = vsel %vm568_vm2, %v617_v38, 0 }
 0x318   : > { %1472 = vmatpush3.bf16.xpose.msra.mxu0 %v622_v39 }
 0x319   : > { %1483 = vmatprep.subr.bf16.mxu0 %v1700_v8 }
 0x31a   : > { %v666_v40 = vpop.permute.xlu1 %665 }
 0x31b   : > { %v671_v41 = vsel %vm568_vm2, %v666_v40, 0 }
 0x31c   : > { %1478 = vmatpush3.bf16.xpose.msra.mxu1 %v671_v41 }
 0x31d   : > { %1489 = vmatprep.subr.bf16.mxu1 %v1700_v8 }
 0x31e   : > { %v715_v44 = vpop.permute.xlu1 %714 }
 0x31f   : > { %v720_v45 = vsel %vm568_vm2, %v715_v44, 0  ;;  %1474 = vmatmul.mubr.msk.bf16.vlgmr.msra.gmra.mrb[8].mxu0 %vm568_vm2, %v548_v43  ;;  %v1600_v44 = vld [vmem:[%s2053_s5] sm:$0xff]  }
 0x320   : > { %1484 = vmatpush3.bf16.xpose.msra.mxu0 %v720_v45  ;;  %1485 = vmatprep.mubr.msk.bf16.mxu0 %vm1701_vm1, %v1700_v8 }
 0x321   : > { %1495 = vmatprep.subr.bf16.mxu0 %v1700_v8 }
 0x322   : > { %v542_v47 = vpop.permute.xlu1 %541 }
 0x323   : > { %v549_v48 = vpack.c.bf16 %v542_v47, %v542_v47 }
 0x325   : > { %1480 = vmatmul.mubr.msk.bf16.vlgmr.msra.gmra.mrb[0].mxu1 %vm568_vm2, %v549_v48 }
 0x326   : > { %1490 = vmatpush3.bf16.msra.mxu1 %v813_v50  ;;  %v856_v51 = vpop.permute.xlu1 %855  ;;  %1491 = vmatprep.mubr.msk.bf16.mxu1 %vm1701_vm1, %v1700_v8 }
 0x327   : > { %v861_v52 = vsel %vm811_vm3, %v856_v51, 0  ;;  %1486 = vmatmul.mubr.msk.bf16.vlgmr.msra.gmra.mrb[12].mxu0 %vm568_vm2, %v550_v49  ;;  %1501 = vmatprep.subr.bf16.mxu1 %v1700_v8 }
 0x328   : > { %1496 = vmatpush3.bf16.msra.mxu0 %v861_v52  ;;  %1497 = vmatprep.mubr.msk.bf16.mxu0 %vm1701_vm1, %v1700_v8 }
 0x329   : > { %1507 = vmatprep.subr.bf16.mxu0 %v1700_v8 }
 0x385   : > { %v609_v53 = vpop.f32.mrb[4].mxu0 }
 0x386   : > { %v1469_v54 = vpop.f32.mrb[5].mxu0  ;;  %v762_v55 = vsel %vm568_vm2, %v609_v53, -inf }
 0x387   : > { %763 = vmax.xlane.f32.xlu1 %v762_v55  ;;  %v612_v56 = vpop.f32.mrb[6].mxu0 }
 0x388   : > { %v1470_v57 = vpop.f32.mrb[7].mxu0 }
 0x3f2   : > { %v658_v58 = vpop.f32.mrb[8].mxu0 }
 0x3f3   : > { %v1475_v59 = vpop.f32.mrb[9].mxu0  ;;  %v765_v60 = vsel %vm568_vm2, %v658_v58, -inf }
 0x3f4   : > { %766 = vmax.xlane.f32.xlu0 %v765_v60  ;;  %v661_v61 = vpop.f32.mrb[10].mxu0 }
 0x3f5   : > { %v1476_v62 = vpop.f32.mrb[11].mxu0 }
 0x3f8   : > { %v707_v63 = vpop.f32.mrb[0].mxu1 }
 0x3f9   : > { %v1481_v1 = vpop.f32.mrb[1].mxu1  ;;  %v768_v2 = vsel %vm568_vm2, %v707_v63, -inf }
 0x3fa   : > { %v710_v3 = vpop.f32.mrb[2].mxu1  ;;  %769 = vmax.xlane.f32.xlu0 %v768_v2  ;;  %v756_v4 = vpop.f32.mrb[12].mxu0 }
 0x3fb   : > { %v1482_v5 = vpop.f32.mrb[3].mxu1  ;;  %v1487_v6 = vpop.f32.mrb[13].mxu0  ;;  %v771_v7 = vsel %vm568_vm2, %v756_v4, -inf }
 0x3fc   : > { %772 = vmax.xlane.f32.xlu1 %v771_v7  ;;  %v759_v9 = vpop.f32.mrb[14].mxu0 }
 0x3fd   : > { %v1488_v10 = vpop.f32.mrb[15].mxu0 }
 0x40d   : > { %903 = vrot.lane.b32.xlu1 %v1867_v31, %s1706_s23 }
 0x410   : > { %951 = vrot.lane.b32.xlu0 %v1870_v34, %s1706_s23  ;;  %s1420_s23 = sshll.u32 %s1802_s29, 7  ;;  %s1307_s29 = scalar_lea.sflag [#allocation3], %s429_s16 }
 0x411   : > { %s2005_s1 = scalar_lea.hbm %s2061_s13, %s1420_s23 }
 0x414   : > { %v764_v11 = vpop.xlane.xlu1 %763 }
 0x415   : > { %v774_v12 = vsub.f32 %v609_v53, %v764_v11 }
 0x417   : > { %v778_v13 = vmul.f32 1.442695, %v774_v12 }
 0x419   : > { %1614 = vpow2.f32 %v778_v13 }
 0x423   : > { %v1615_v14 = vpop.eup %1614 }
 0x424   : > { %v802_v15 = vpack.c.bf16 %v1615_v14, %v1615_v14  ;;  %v786_v32 = vsel %vm568_vm2, %v1615_v14, 0.0  ;;  %v1399_v14 = vld [vmem:[%s2054_s6] ss:$0 sm:$0xff] }
 0x426   : > { %1492 = vmatmul.mubr.msk.bf16.vlgmr.msra.gmra.mrb[4].mxu1 %vm568_vm2, %v802_v15 }
 0x427   : > { %1503 = vmatprep.mubr.msk.bf16.mxu1 %vm1701_vm1, %v1700_v8 }
 0x481   : > { %v767_v16 = vpop.xlane.xlu0 %766 }
 0x482   : > { %v775_v17 = vsub.f32 %v658_v58, %v767_v16 }
 0x484   : > { %v780_v18 = vmul.f32 1.442695, %v775_v17 }
 0x486   : > { %1616 = vpow2.f32 %v780_v18 }
 0x487   : > { %v770_v19 = vpop.xlane.xlu0 %769 }
 0x488   : > { %v776_v20 = vsub.f32 %v707_v63, %v770_v19 }
 0x489   : > { %v773_v21 = vpop.xlane.xlu1 %772 }
 0x48a   : > { %v782_v22 = vmul.f32 1.442695, %v776_v20  ;;  %v777_v23 = vsub.f32 %v756_v4, %v773_v21 }
 0x48b   : > { %v952_v28 = vpop.permute.xlu0 %951 }
 0x48c   : > { %1618 = vpow2.f32 %v782_v22  ;;  %v784_v24 = vmul.f32 1.442695, %v777_v23  ;;  %v957_v31 = vsel %vm811_vm3, %v952_v28, 0 }
 0x48d   : > { %v904_v25 = vpop.permute.xlu1 %903 }
 0x48e   : > { %1620 = vpow2.f32 %v784_v24  ;;  %v909_v26 = vsel %vm811_vm3, %v904_v25, 0 }
 0x48f   : > { %1502 = vmatpush3.bf16.msra.mxu1 %v909_v26 }
 0x490   : > { %v1617_v27 = vpop.eup %1616  ;;  %1513 = vmatprep.subr.bf16.mxu1 %v1700_v8 }
 0x491   : > { %v789_v29 = vsel %vm568_vm2, %v1617_v27, 0.0  ;;  %v803_v30 = vpack.c.bf16 %v1617_v27, %v1617_v27  ;;  %v1602_v27 = vld [vmem:[%s2057_s9] sm:$0xff]  }
 0x492   : > { %790 = vadd.xlane.f32.xlu1 %v789_v29 }
 0x493   : > { %1498 = vmatmul.mubr.msk.bf16.vlgmr.msra.gmra.mrb[16].mxu0 %vm568_vm2, %v803_v30 }
 0x494   : > { %1508 = vmatpush3.bf16.msra.mxu0 %v957_v31  ;;  %1509 = vmatprep.mubr.msk.bf16.mxu0 %vm1701_vm1, %v1700_v8 }
 0x495   : > { %1521 = vmatprep.subr.bf16.mxu0 %v1700_v8 }
 0x496   : > { %v1619_v33 = vpop.eup %1618  ;;  %787 = vadd.xlane.f32.xlu1 %v786_v32  ;;  %v1403_v32 = vld [vmem:[%s2055_s7] ss:$0 sm:$0xff] }
 0x497   : > { %v792_v34 = vsel %vm568_vm2, %v1619_v33, 0.0  ;;  %v804_v35 = vpack.c.bf16 %v1619_v33, %v1619_v33 }
 0x498   : > { %v1621_v36 = vpop.eup %1620  ;;  %793 = vadd.xlane.f32.xlu0 %v792_v34  ;;  %v1404_v34 = vld [vmem:[%s2056_s8] ss:$0 sm:$0xff] }
 0x499   : > { %1504 = vmatmul.mubr.msk.bf16.vlgmr.msra.gmra.mrb[8].mxu1 %vm568_vm2, %v804_v35  ;;  %v805_v37 = vpack.c.bf16 %v1621_v36, %v1621_v36  ;;  %v795_v38 = vsel %vm568_vm2, %v1621_v36, 0.0 }
 0x49a   : > { %1517 = vmatprep.mubr.msk.bf16.mxu1 %vm1701_vm1, %v1700_v8  ;;  %1514 = vmatpush3.bf16.msra.mxu1 %v1600_v44  ;;  %v1610_v44 = vld [vmem:[%s2059_s11 + $0x30] sm:$0xff]  }
 0x49b   : > { %1510 = vmatmul.mubr.msk.bf16.vlgmr.msra.gmra.mrb[20].mxu0 %vm568_vm2, %v805_v37  ;;  %1515 = vmatprep.subr.bf16.mxu1 %v1700_v8 }
 0x49c   : > { %796 = vadd.xlane.f32.xlu0 %v795_v38  ;;  %1525 = vmatprep.mubr.msk.bf16.mxu0 %vm1701_vm1, %v1700_v8  ;;  %v1604_v38 = vld [vmem:[%s2059_s11] sm:$0xff]  }
 0x49d   : > { %1522 = vmatpush3.bf16.msra.mxu0 %v1602_v27 }
 0x49e   : > { %1516 = vmatpush3.bf16.msra.mxu1 %v1601_v46  ;;  %1523 = vmatprep.subr.bf16.mxu0 %v1700_v8  ;;  %v1405_v46 = vld [vmem:[%s2058_s10] ss:$0 sm:$0xff] }
 0x49f   : > { %1529 = vmatprep.subr.bf16.mxu1 %v1700_v8 }
 0x4f9   : > { %v849_v39 = vpop.f32.mrb[4].mxu1 }
 0x4fa   : > { %v1493_v40 = vpop.f32.mrb[5].mxu1 }
 0x4fb   : > { %v852_v41 = vpop.f32.mrb[6].mxu1  ;;  %v1606_v40 = vld [vmem:[%s2059_s11 + $0x10] sm:$0xff]  }
 0x4fc   : > { %v1494_v42 = vpop.f32.mrb[7].mxu1  ;;  %v1607_v41 = vld [vmem:[%s2059_s11 + $0x18] sm:$0xff]  }
 0x4fd   : > { %v1608_v42 = vld [vmem:[%s2059_s11 + $0x20] sm:$0xff]  }
 0x51f   : > { %v791_v43 = vpop.xlane.xlu1 %790 }
 0x520   : > { %1622 = vrcp.f32 %v791_v43  ;;  %v1609_v43 = vld [vmem:[%s2059_s11 + $0x28] sm:$0xff]  }
 0x523   : > { %v788_v3 = vpop.xlane.xlu1 %787 }
 0x525   : > { %v794_v45 = vpop.xlane.xlu0 %793 }
 0x526   : > { %1624 = vrcp.f32 %v794_v45  ;;  %v1611_v45 = vld [vmem:[%s2059_s11 + $0x38] sm:$0xff]  }
 0x529   : > { %v797_v47 = vpop.xlane.xlu0 %796 }
 0x52a   : > { %v1623_v48 = vpop.eup %1622  ;;  %1626 = vrcp.f32 %v797_v47 }
 0x52b   : > { %1628 = vrcp.f32 %v788_v3 }
 0x530   : > { %v1625_v54 = vpop.eup %1624 }
 0x534   : > { %v1627_v62 = vpop.eup %1626 }
 0x535   : > { %v1629_v4 = vpop.eup %1628 }
 0x536   : > { %v999_v7 = vmul.f32 %v1629_v4, %v849_v39  ;;  %v1605_v39 = vld [vmem:[%s2059_s11 + $0x8] sm:$0xff]  }
 0x566   : > { %v897_v49 = vpop.f32.mrb[16].mxu0 }
 0x567   : > { %v1000_v50 = vmul.f32 %v1623_v48, %v897_v49  ;;  %v1499_v51 = vpop.f32.mrb[17].mxu0 }
 0x568   : > { %v900_v52 = vpop.f32.mrb[18].mxu0 }
 0x569   : > { %1004 = vrot.lane.b32.xlu0 %v1000_v50, %s1707_s20  ;;  %v1500_v53 = vpop.f32.mrb[19].mxu0  ;;  %s1383_s20 = sshll.u32 %s429_s16, 3 }
 0x56a   : > { %s431_s24 = scalar_lea.vmem [#allocation2], %s1383_s20 }
 0x56b   : > { %s1320_s30 = sshll.u32 %s431_s24, 4  ;;  %s2007_s30 = int_to_ptr.vmem [resolvable:$true] %s1320_s30 }
 0x56c   : > { %v945_v55 = vpop.f32.mrb[8].mxu1  ;;  %s1636_s20 = scalar_lea.vmem %s2007_s30, 128 }
 0x56d   : > { %v1001_v56 = vmul.f32 %v1625_v54, %v945_v55  ;;  %v1505_v57 = vpop.f32.mrb[9].mxu1  ;;  %p1637_p11 = scmp.ne.s32.totalorder %s2007_s30, %s1636_s20 }
 0x56e   : > { %v948_v58 = vpop.f32.mrb[10].mxu1  ;;  %v993_v59 = vpop.f32.mrb[20].mxu0 }
 0x56f   : > { %1008 = vrot.lane.b32.xlu1 %v1001_v56, %s1708_s21  ;;  %v1506_v60 = vpop.f32.mrb[11].mxu1  ;;  %v1511_v61 = vpop.f32.mrb[21].mxu0  ;;  %v1002_v1 = vmul.f32 %v1627_v62, %v993_v59  ;;  %v1410_v58 = vld [vmem:[%s2060_s12] ss:$0 sm:$0xff]  ;;  %p1638_p12 = pnand %p1637_p11, %p1819_p5  ;;  %s1710_s21 = smov [#allocation2]  }
 0x570   : > { %v996_v63 = vpop.f32.mrb[22].mxu0 }
 0x571   : > { %v1512_v2 = vpop.f32.mrb[23].mxu0  ;;  %p1639_p13 = pneg %p1638_p12 }
 0x573   : > { %1012 = vrot.lane.b32.xlu1 %v1002_v1, %s1709_s22  ;;  %s1640_s22 = sshll.u32 %s1710_s21, 4  ;;  %s1641_s22 = int_to_ptr.vmem [resolvable:$false] %s1640_s22 }
 0x574   : > { %s1642_s2 = scalar_lea.vmem %s1641_s22, 256  ;;  %p1643_p0 = scmp.lt.s32.totalorder %s2007_s30, %s1641_s22 }
 0x575   : > { %p1644_p1 = scmp.lt.s32.totalorder %s1642_s2, %s1636_s20 }
 0x577   : > { %p1645_p2 = por %p1644_p1, %p1643_p0 }
 0x579   : > { %p1646_p3 = pnand %p1645_p2, %p1639_p13 }
 0x5db   : > { %v1005_v5 = vpop.permute.xlu0 %1004 }
 0x5dc   : > { %v1015_v9 = vsel %vm568_vm2, %v999_v7, %v1005_v5 }
 0x5e1   : > { %v1009_v6 = vpop.permute.xlu1 %1008 }
 0x5e2   : > { %v1017_v10 = vsel %vm1016_vm4, %v1015_v9, %v1009_v6 }
 0x5e5   : > { %v1013_v11 = vpop.permute.xlu1 %1012 }
 0x5e6   : > { %v1019_v12 = vsel %vm1018_vm5, %v1017_v10, %v1013_v11 }
 0x5e7   : > { %v1020_v13 = vpack.c.bf16 %v1019_v12, %v1019_v12 }
 0x5e9   : > { %1518 = vmatmul.mubr.msk.bf16.vlgmr.msra.gmra.mrb[12].mxu1 %vm438_vm0, %v1020_v13 }
 0x5ea   : > { %1545 = vmatprep.mubr.msk.bf16.mxu1 %vm1701_vm1, %v1700_v8  ;;  %1530 = vmatpush3.bf16.msra.mxu1 %v1604_v38 }
 0x5eb   : > { %1531 = vmatprep.subr.bf16.mxu1 %v1700_v8 }
 0x5ee   : > { %1532 = vmatpush3.bf16.msra.mxu1 %v1605_v39 }
 0x5ef   : > { %1533 = vmatprep.subr.bf16.mxu1 %v1700_v8 }
 0x5f2   : > { %1534 = vmatpush3.bf16.msra.mxu1 %v1606_v40 }
 0x5f3   : > { %1535 = vmatprep.subr.bf16.mxu1 %v1700_v8 }
 0x5f6   : > { %1536 = vmatpush3.bf16.msra.mxu1 %v1607_v41 }
 0x5f7   : > { %1537 = vmatprep.subr.bf16.mxu1 %v1700_v8 }
 0x5fa   : > { %1538 = vmatpush3.bf16.msra.mxu1 %v1608_v42 }
 0x5fb   : > { %1539 = vmatprep.subr.bf16.mxu1 %v1700_v8 }
 0x5fe   : > { %1540 = vmatpush3.bf16.msra.mxu1 %v1609_v43 }
 0x5ff   : > { %1541 = vmatprep.subr.bf16.mxu1 %v1700_v8 }
 0x602   : > { %1542 = vmatpush3.bf16.msra.mxu1 %v1610_v44 }
 0x603   : > { %1543 = vmatprep.subr.bf16.mxu1 %v1700_v8 }
 0x606   : > { %1544 = vmatpush3.bf16.msra.mxu1 %v1611_v45 }
 0x6bc   : > { %v1081_v15 = vpop.f32.mrb[12].mxu1 }
 0x6bd   : > { %v1082_v16 = vadd.f32 %v1399_v14, %v1081_v15  ;;  %v1519_v17 = vpop.f32.mrb[13].mxu1 }
 0x6be   : > { %v1084_v18 = vpop.f32.mrb[14].mxu1 }
 0x6bf   : > { %v1942_v19 = vadd.f32 %v1082_v16, %v1834_v0  ;;  %v1520_v20 = vpop.f32.mrb[15].mxu1  ;;  %v1603_v0 = vld [vmem:[%s2057_s9 + $0x8] sm:$0xff]  }
 0x6c0   : > { %1524 = vmatpush3.bf16.msra.mxu0 %v1603_v0 }
 0x6c1   : > { %v1088_v21 = vsel %vm438_vm0, %v1942_v19, 0.0 }
 0x6c2   : > { %1089 = vadd.xlane.f32.xlu0 %v1088_v21 }
 0x74f   : > { %v1090_v22 = vpop.xlane.xlu0 %1089 }
 0x750   : > { %v1091_v23 = vmul.f32 0.03125, %v1090_v22 }
 0x752   : > { %v1092_v24 = vsub.f32 %v1942_v19, %v1091_v23 }
 0x754   : > { %v1093_v25 = vmul.f32 %v1092_v24, %v1092_v24 }
 0x756   : > { %v1094_v26 = vsel %vm438_vm0, %v1093_v25, 0.0 }
 0x757   : > { %1095 = vadd.xlane.f32.xlu1 %v1094_v26 }
 0x7e4   : > { %v1096_v28 = vpop.xlane.xlu1 %1095 }
 0x7e5   : > { %v1097_v29 = vmul.f32 0.03125, %v1096_v28 }
 0x7e7   : > { %v1098_v30 = vadd.f32 1e-05, %v1097_v29 }
 0x7e9   : > { %1630 = vrsqrt.f32 %v1098_v30 }
 0x7f3   : > { %v1631_v31 = vpop.eup %1630 }
 0x7f4   : > { %v1100_v33 = vmul.f32 %v1631_v31, %v1092_v24 }
 0x7f6   : > { %v1108_v35 = vmul.f32 %v1403_v32, %v1100_v33 }
 0x7f8   : > { %v1116_v36 = vadd.f32 %v1404_v34, %v1108_v35 }
 0x7fa   : > { %v1117_v37 = vpack.c.bf16 %v1116_v36, %v1116_v36 }
 0x7fc   : > { %1526 = vmatmul.mubr.msk.bf16.vlgmr.msra.gmra.mrb[24].mxu0 %vm438_vm0, %v1117_v37 }
 0x8cf   : > { %v1178_v47 = vpop.f32.mrb[24].mxu0 }
 0x8d0   : > { %v1179_v48 = vadd.f32 %v1405_v46, %v1178_v47  ;;  %v1527_v49 = vpop.f32.mrb[25].mxu0 }
 0x8d1   : > { %v1181_v50 = vpop.f32.mrb[26].mxu0 }
 0x8d2   : > { %v1409_v51 = vmul.f32 -1.702, %v1179_v48  ;;  %v1528_v52 = vpop.f32.mrb[27].mxu0 }
 0x8d4   : > { %v1186_v53 = vmul.f32 1.442695, %v1409_v51 }
 0x8d6   : > { %1632 = vpow2.f32 %v1186_v53 }
 0x8e0   : > { %v1633_v8 = vpop.eup %1632 }
 0x8e1   : > { %v1188_v54 = vadd.f32 1.0, %v1633_v8 }
 0x8e3   : > { %1634 = vrcp.f32 %v1188_v54 }
 0x8ed   : > { %v1635_v55 = vpop.eup %1634 }
 0x8ee   : > { %v1191_v56 = vmul.f32 %v1635_v55, %v1179_v48 }
 0x8f0   : > { %v1192_v57 = vpack.c.bf16 %v1191_v56, %v1191_v56 }
 0x8f2   : > { %1546 = vmatmul.mubr.bf16.vlgmr.msra.gmra.mrb[16].mxu1 %v1192_v57 }
 0x9c5   : > { %v1298_v59 = vpop.f32.mrb[16].mxu1 }
 0x9c6   : > { %v1299_v60 = vadd.f32 %v1410_v58, %v1298_v59  ;;  %v1547_v61 = vpop.f32.mrb[17].mxu1 }
 0x9c7   : > { %v1301_v62 = vpop.f32.mrb[18].mxu1 }
 0x9c8   : > { %v1304_v63 = vadd.f32 %v1299_v60, %v1942_v19  ;;  %v1548_v1 = vpop.f32.mrb[19].mxu1 }
 0x9ca   : > { %1305 = vst.msk [vmem:[%s431_s24] sm:$0xff] %vm438_vm0, %v1304_v63 }
 0x9cb   : > { %1649 = shalt.err (!%p1646_p3)
}
 0x9cc   : > { %s1650_s0 = scalar_lea.hbm %s2005_s1, 128  ;;  %s1654_s24 = scalar_lea.hbm %s2061_s13, 256 }
 0x9cd   : > { %p1651_p4 = scmp.ne.s32.totalorder %s2005_s1, %s1650_s0  ;;  %p1655_p9 = scmp.lt.u32.totalorder %s2005_s1, %s2061_s13 }
 0x9ce   : > { %p1656_p10 = scmp.lt.u32.totalorder %s1654_s24, %s1650_s0  ;;  %p1658_p12 = scmp.lt.u32.totalorder %s1650_s0, %s2005_s1 }
 0x9cf   : > { %p1652_p7 = pnand %p1651_p4, %p1819_p5 }
 0x9d0   : > { %p1657_p11 = por %p1656_p10, %p1655_p9 }
 0x9d1   : > { %p1653_p8 = pneg %p1652_p7 }
 0x9d2   : > { %p1659_p13 = por %p1658_p12, %p1657_p11 }
 0x9d4   : > { %p1660_p0 = pnand %p1659_p13, %p1653_p8 }
 0x9d6   : > { %1663 = shalt.err (!%p1660_p0)
}
 0x9d7   : > { %1549 = dma.vmem_to_hbm [thread:$0]  (%p1819_p5), %s2007_s30, 128, %s2005_s1, %s1307_s29  }
 0x9d8 PF: > { %p1555_p1 = scmp.ge.s32.totalorder %s1698_s28, 2  ;;  %s1332_s2 = sand.u32 1, %s1686_s25  }
 0x9d9   : > { %s1333_s20 = scalar_lea.sflag [#allocation3], %s1332_s2 }
 0x9da   : > { %p1552_p2 = pnand %p1555_p1, %p1823_p6 }
 0x9dc   : > { %1681 = dma.done.wait (!%p1552_p2), %s1333_s20, 128  }
 0x9dd   : > { %1683 = vsyncadd (!%p1552_p2), %s1333_s20, 4294967168  ;;  %p23_p3 = scmp.ge.s32.totalorder %s1806_s14, 4   ;;  %s2070_s25 = smov %s1690_s26 }
 0x9de   : > { %s2071_s26 = smov %s1694_s27  ;;  %s2072_s27 = smov %s1817_s17 }
 0x9df   : > { %s2073_s28 = smov %s1806_s14  ;;  %25 = sbr.rel (!%p23_p3) target bundleno = 7 (0x7), region = 107 }
 0x9e6   :  { %1338 = vsyncpa [#allocation3], 1 }
 0x9e7   :  { %1340 = vsyncpa [#allocation3 + $0x1], 1 }

// kernel: tpu_custom_call.1
= control target key start
LH: loop header
LB: loop body
LE: loop exit
PB: predicated region body
PF: predicated region fallthrough
CT: control target
= control target key end

     0   :  { %s2048_s0 = inlined_call_operand.vmem [shape: f32[2,8,32], index: 0, kind: input, shape index: {}]   ;;  %s2049_s1 = inlined_call_operand.vmem [shape: f32[1,32], index: 1, kind: input, shape index: {}]   ;;  %s2050_s2 = inlined_call_operand.vmem [shape: f32[1,32], index: 2, kind: input, shape index: {}]   ;;  %s2051_s3 = inlined_call_operand.vmem [shape: bf16[32,96], index: 3, kind: input, shape index: {}]   ;;  %s2052_s4 = inlined_call_operand.vmem [shape: f32[1,96], index: 4, kind: input, shape index: {}]   ;;  %s2053_s5 = inlined_call_operand.vmem [shape: bf16[32,32], index: 5, kind: input, shape index: {}]   ;;  %s2054_s6 = inlined_call_operand.vmem [shape: f32[1,32], index: 6, kind: input, shape index: {}]   ;;  %s2055_s7 = inlined_call_operand.vmem [shape: f32[1,32], index: 7, kind: input, shape index: {}]   ;;  %s2056_s8 = inlined_call_operand.vmem [shape: f32[1,32], index: 8, kind: input, shape index: {}]   ;;  %s2057_s9 = inlined_call_operand.vmem [shape: bf16[32,128], index: 9, kind: input, shape index: {}]   ;;  %s2058_s10 = inlined_call_operand.vmem [shape: f32[1,128], index: 10, kind: input, shape index: {}]   ;;  %s2059_s11 = inlined_call_operand.vmem [shape: bf16[128,32], index: 11, kind: input, shape index: {}]   ;;  %s2060_s12 = inlined_call_operand.vmem [shape: f32[1,32], index: 12, kind: input, shape index: {}]   ;;  %s2061_s13 = inlined_call_operand.hbm [shape: f32[2,8,32], index: 13, kind: output, shape index: {}]  }
   0x1   :  { %2062 = sst [smem:[#allocation5_spill]] %s2048_s0 }
   0x2   :  { %2063 = sst [smem:[#allocation6_spill]] %s2049_s1 }
   0x3   :  { %2064 = sst [smem:[#allocation7_spill]] %s2050_s2 }
   0x4   :  { %18 = vsyncpa [#allocation3], 0 }
   0x5   :  { %20 = vsyncpa [#allocation3 + $0x1], 0  ;;  %s1781_s25 = smov 0   ;;  %s1783_s26 = smov 0  }
   0x6   :  { %s1785_s27 = smov 0   ;;  %s1787_s28 = smov 0  }
   0x7 LB: > { %s1802_s29 = sadd.s32 4294967295, %s1698_s28   ;;  %s1379_s30 = sadd.s32 4294967294, %s1698_s28   ;;  %s1698_s28 = sphi %s1787_s28, %s2073_s28   ;;  %s1694_s27 = sphi %s1785_s27, %s2072_s27   ;;  %s1690_s26 = sphi %s1783_s26, %s2071_s26   ;;  %s1686_s25 = sphi %s1781_s25, %s2070_s25  }
   0x8   : > { %s1806_s14 = sadd.s32 1, %s1698_s28   ;;  %s311_s15 = sadd.s32 1, %s1694_s27 }
   0x9   : > { %s308_s16 = ssub.s32 %s1698_s28, %s1806_s14  ;;  %p321_p0 = scmp.ne.s32.totalorder %s1694_s27, %s1690_s26 }
   0xa   : > { %p309_p1 = scmp.eq.s32.totalorder %s308_s16, 0  ;;  %p322_p2 = scmp.eq.s32.totalorder %s1802_s29, 1 }
   0xb   : > { %p327_p3 = scmp.ne.s32.totalorder %s1690_s26, %s1686_s25  ;;  %p328_p4 = scmp.eq.s32.totalorder %s1379_s30, 1 }
   0xc   : > { %s1817_s17 = scalar_select %p309_p1, %s1694_s27, %s311_s15  }
   0xd   : > { %p1819_p5 = por %p322_p2, %p321_p0  ;;  %p1823_p6 = por %p328_p4, %p327_p3 }
   0xe   : > { %p1382_p7 = scmp.ge.s32.totalorder %s1698_s28, 1  ;;  %p389_p8 = scmp.lt.s32.totalorder %s1698_s28, 3 }
  0x10   : > { %p390_p9 = pnand %p1382_p7, %p389_p8 }
  0x11   : > { %p432_p10 = scmp.lt.s32.totalorder (!%p390_p9), %s1802_s29, 1  ;;  %vm438_vm0 = vcmask (!%p390_p9), 261120   ;;  %s2067_s0 = sld [smem:[#allocation5_spill]] (!%p390_p9)  ;;  %v1598_v7 = vld [vmem:[%s2051_s3] sm:$0xff] (!%p390_p9)   ;;  %v1700_v8 = vmov (!%p390_p9), 0.0   ;;  %vm1701_vm1 = vmmov (!%p390_p9), 0  }
  0x12   : > { %393 = sbr.rel (%p390_p9) target bundleno = 2520 (0x9d8), region = 72  ;;  %1457 = vmatprep.subr.bf16.mxu0 (!%p390_p9), %v1700_v8  ;;  %1461 = vmatprep.mubr.msk.bf16.mxu0 (!%p390_p9), %vm1701_vm1, %v1700_v8  ;;  %v1599_v9 = vld [vmem:[%s2051_s3 + $0x8] sm:$0xff] (!%p390_p9)   ;;  %s2068_s1 = sld [smem:[#allocation6_spill]] (!%p390_p9)  ;;  %v1387_v20 = vld [vmem:[%s2052_s4] ss:$0 sm:$0xff] (!%p390_p9)  ;;  %vm568_vm2 = vcmask (!%p390_p9), 64512  }
  0x13   : > { %1458 = vmatpush3.bf16.msra.mxu0 (!%p390_p9), %v1598_v7  ;;  %1477 = vmatprep.subr.bf16.mxu1 (!%p390_p9), %v1700_v8  ;;  %s2069_s2 = sld [smem:[#allocation7_spill]] (!%p390_p9)  ;;  %s1702_s16 = smov (!%p390_p9), 104   ;;  %vm811_vm3 = vcmask (!%p390_p9), 1043456   ;;  %vm1016_vm4 = vcmask (!%p390_p9), 130048   ;;  %vm1018_vm5 = vcmask (!%p390_p9), 195584  }
  0x14   : > { %1459 = vmatprep.subr.bf16.mxu0 (!%p390_p9), %v1700_v8  ;;  %1479 = vmatprep.mubr.msk.bf16.mxu1 (!%p390_p9), %vm1701_vm1, %v1700_v8  ;;  %s1705_s22 = smov (!%p390_p9), 96   ;;  %s1706_s23 = smov (!%p390_p9), 64  }
  0x17   : > { %1460 = vmatpush3.bf16.msra.mxu0 (!%p390_p9), %v1599_v9 }
  0x18   : > { %1465 = vmatprep.subr.bf16.mxu0 (!%p390_p9), %v1700_v8  ;;  %v1385_v14 = vld [vmem:[%s2068_s1] ss:$0 sm:$0xff] (!%p390_p9) }
  0x19   : > { %s433_s20 = scalar_select %p432_p10, %s1802_s29, 1  ;;  %v1386_v16 = vld [vmem:[%s2069_s2] ss:$0 sm:$0xff] }
  0x1b   : > { %s1384_s21 = sshll.u32 %s433_s20, 3  ;;  %s1703_s20 = smov 120  }
  0x1c   : > { %s435_s24 = scalar_lea.vmem %s2067_s0, %s1384_s21  ;;  %s1704_s21 = smov 112  }
  0x1d   : > { %v1834_v0 = vld [vmem:[%s435_s24] sm:$0xff] }
  0x1e   : > { %v439_v1 = vsel %vm438_vm0, %v1834_v0, 0.0 }
  0x1f   : > { %440 = vadd.xlane.f32.xlu0 %v439_v1 }
  0xac   : > { %v441_v2 = vpop.xlane.xlu0 %440 }
  0xad   : > { %v443_v3 = vmul.f32 0.03125, %v441_v2 }
  0xaf   : > { %v444_v4 = vsub.f32 %v1834_v0, %v443_v3 }
  0xb1   : > { %v445_v5 = vmul.f32 %v444_v4, %v444_v4 }
  0xb3   : > { %v446_v6 = vsel %vm438_vm0, %v445_v5, 0.0 }
  0xb4   : > { %447 = vadd.xlane.f32.xlu0 %v446_v6 }
 0x141   : > { %v448_v10 = vpop.xlane.xlu0 %447 }
 0x142   : > { %v449_v11 = vmul.f32 0.03125, %v448_v10 }
 0x144   : > { %v450_v12 = vadd.f32 1e-05, %v449_v11 }
 0x146   : > { %1612 = vrsqrt.f32 %v450_v12 }
 0x150   : > { %v1613_v13 = vpop.eup %1612 }
 0x151   : > { %v452_v15 = vmul.f32 %v1613_v13, %v444_v4 }
 0x153   : > { %v460_v17 = vmul.f32 %v1385_v14, %v452_v15 }
 0x155   : > { %v468_v18 = vadd.f32 %v1386_v16, %v460_v17 }
 0x157   : > { %v469_v19 = vpack.c.bf16 %v468_v18, %v468_v18 }
 0x159   : > { %1462 = vmatmul.mubr.msk.bf16.vlgmr.msra.gmra.mrb[0].mxu0 %vm438_vm0, %v469_v19 }
 0x15a   : > { %1467 = vmatprep.mubr.msk.bf16.mxu0 %vm1701_vm1, %v1700_v8 }
 0x22c   : > { %v530_v21 = vpop.f32.mrb[0].mxu0 }
 0x22d   : > { %v531_v22 = vadd.f32 %v1387_v20, %v530_v21  ;;  %v1463_v23 = vpop.f32.mrb[1].mxu0 }
 0x22e   : > { %v533_v24 = vpop.f32.mrb[2].mxu0 }
 0x22f   : > { %558 = vrot.lane.b32.xlu0 %v531_v22, %s1702_s16  ;;  %552 = vrot.lane.b32.xlu1 %v531_v22, %s1703_s20  ;;  %v1464_v25 = vpop.f32.mrb[3].mxu0  ;;  %v536_v26 = vmul.f32 0.35355338, %v531_v22  ;;  %v561_v27 = vpack.c.bf16 %v531_v22, %v531_v22 }
 0x231   : > { %v547_v36 = vpack.c.bf16 %v536_v26, %v536_v26 }
 0x233   : > { %555 = vrot.lane.b32.xlu1 %v531_v22, %s1704_s21  ;;  %544 = vrot.lane.b32.xlu0 %v536_v26, %s1702_s16  ;;  %s429_s16 = sand.u32 1, %s1690_s26  }
 0x237   : > { %566 = vrot.lane.b32.xlu1 %v561_v27, %s1705_s22  ;;  %806 = vrot.lane.b32.xlu0 %v561_v27, %s1706_s23 }
 0x23b   : > { %538 = vrot.lane.b32.xlu1 %v536_v26, %s1703_s20  ;;  %s1707_s20 = smov 8  }
 0x2a1   : > { %v553_v28 = vpop.permute.xlu1 %552  ;;  %v559_v32 = vpop.permute.xlu0 %558 }
 0x2a2   : > { %v562_v29 = vpack.c.bf16 %v553_v28, %v553_v28  ;;  %v1870_v34 = vpack.c.bf16 %v559_v32, %v559_v32 }
 0x2a4   : > { %616 = vrot.lane.b32.xlu1 %v562_v29, %s1705_s22 }
 0x2a5   : > { %v556_v30 = vpop.permute.xlu1 %555  ;;  %v545_v42 = vpop.permute.xlu0 %544 }
 0x2a6   : > { %v1867_v31 = vpack.c.bf16 %v556_v30, %v556_v30  ;;  %v550_v49 = vpack.c.bf16 %v545_v42, %v545_v42 }
 0x2a8   : > { %665 = vrot.lane.b32.xlu1 %v1867_v31, %s1705_s22 }
 0x2a9   : > { %v567_v33 = vpop.permute.xlu1 %566  ;;  %v807_v46 = vpop.permute.xlu0 %806 }
 0x2aa   : > { %v573_v35 = vsel %vm568_vm2, %v567_v33, 0  ;;  %v813_v50 = vsel %vm811_vm3, %v807_v46, 0  ;;  %v1601_v46 = vld [vmem:[%s2053_s5 + $0x8] sm:$0xff]  }
 0x2ab   : > { %1466 = vmatpush3.bf16.xpose.msra.mxu0 %v573_v35 }
 0x2ac   : > { %714 = vrot.lane.b32.xlu1 %v1870_v34, %s1705_s22  ;;  %1471 = vmatprep.subr.bf16.mxu0 %v1700_v8  ;;  %s1709_s22 = smov 24  }
 0x2ad   : > { %v539_v37 = vpop.permute.xlu1 %538 }
 0x2ae   : > { %v548_v43 = vpack.c.bf16 %v539_v37, %v539_v37 }
 0x2b0   : > { %541 = vrot.lane.b32.xlu1 %v536_v26, %s1704_s21  ;;  %s1708_s21 = smov 16  }
 0x2b2   : > { %1468 = vmatmul.mubr.msk.bf16.vlgmr.msra.gmra.mrb[4].mxu0 %vm568_vm2, %v547_v36 }
 0x2b3   : > { %1473 = vmatprep.mubr.msk.bf16.mxu0 %vm1701_vm1, %v1700_v8 }
 0x2b4   : > { %855 = vrot.lane.b32.xlu1 %v562_v29, %s1706_s23 }
 0x316   : > { %v617_v38 = vpop.permute.xlu1 %616 }
 0x317   : > { %v622_v39 = vsel %vm568_vm2, %v617_v38, 0 }
 0x318   : > { %1472 = vmatpush3.bf16.xpose.msra.mxu0 %v622_v39 }
 0x319   : > { %1483 = vmatprep.subr.bf16.mxu0 %v1700_v8 }
 0x31a   : > { %v666_v40 = vpop.permute.xlu1 %665 }
 0x31b   : > { %v671_v41 = vsel %vm568_vm2, %v666_v40, 0 }
 0x31c   : > { %1478 = vmatpush3.bf16.xpose.msra.mxu1 %v671_v41 }
 0x31d   : > { %1489 = vmatprep.subr.bf16.mxu1 %v1700_v8 }
 0x31e   : > { %v715_v44 = vpop.permute.xlu1 %714 }
 0x31f   : > { %v720_v45 = vsel %vm568_vm2, %v715_v44, 0  ;;  %1474 = vmatmul.mubr.msk.bf16.vlgmr.msra.gmra.mrb[8].mxu0 %vm568_vm2, %v548_v43  ;;  %v1600_v44 = vld [vmem:[%s2053_s5] sm:$0xff]  }
 0x320   : > { %1484 = vmatpush3.bf16.xpose.msra.mxu0 %v720_v45  ;;  %1485 = vmatprep.mubr.msk.bf16.mxu0 %vm1701_vm1, %v1700_v8 }
 0x321   : > { %1495 = vmatprep.subr.bf16.mxu0 %v1700_v8 }
 0x322   : > { %v542_v47 = vpop.permute.xlu1 %541 }
 0x323   : > { %v549_v48 = vpack.c.bf16 %v542_v47, %v542_v47 }
 0x325   : > { %1480 = vmatmul.mubr.msk.bf16.vlgmr.msra.gmra.mrb[0].mxu1 %vm568_vm2, %v549_v48 }
 0x326   : > { %1490 = vmatpush3.bf16.msra.mxu1 %v813_v50  ;;  %v856_v51 = vpop.permute.xlu1 %855  ;;  %1491 = vmatprep.mubr.msk.bf16.mxu1 %vm1701_vm1, %v1700_v8 }
 0x327   : > { %v861_v52 = vsel %vm811_vm3, %v856_v51, 0  ;;  %1486 = vmatmul.mubr.msk.bf16.vlgmr.msra.gmra.mrb[12].mxu0 %vm568_vm2, %v550_v49  ;;  %1501 = vmatprep.subr.bf16.mxu1 %v1700_v8 }
 0x328   : > { %1496 = vmatpush3.bf16.msra.mxu0 %v861_v52  ;;  %1497 = vmatprep.mubr.msk.bf16.mxu0 %vm1701_vm1, %v1700_v8 }
 0x329   : > { %1507 = vmatprep.subr.bf16.mxu0 %v1700_v8 }
 0x385   : > { %v609_v53 = vpop.f32.mrb[4].mxu0 }
 0x386   : > { %v1469_v54 = vpop.f32.mrb[5].mxu0  ;;  %v762_v55 = vsel %vm568_vm2, %v609_v53, -inf }
 0x387   : > { %763 = vmax.xlane.f32.xlu1 %v762_v55  ;;  %v612_v56 = vpop.f32.mrb[6].mxu0 }
 0x388   : > { %v1470_v57 = vpop.f32.mrb[7].mxu0 }
 0x3f2   : > { %v658_v58 = vpop.f32.mrb[8].mxu0 }
 0x3f3   : > { %v1475_v59 = vpop.f32.mrb[9].mxu0  ;;  %v765_v60 = vsel %vm568_vm2, %v658_v58, -inf }
 0x3f4   : > { %766 = vmax.xlane.f32.xlu0 %v765_v60  ;;  %v661_v61 = vpop.f32.mrb[10].mxu0 }
 0x3f5   : > { %v1476_v62 = vpop.f32.mrb[11].mxu0 }
 0x3f8   : > { %v707_v63 = vpop.f32.mrb[0].mxu1 }
 0x3f9   : > { %v1481_v1 = vpop.f32.mrb[1].mxu1  ;;  %v768_v2 = vsel %vm568_vm2, %v707_v63, -inf }
 0x3fa   : > { %v710_v3 = vpop.f32.mrb[2].mxu1  ;;  %769 = vmax.xlane.f32.xlu0 %v768_v2  ;;  %v756_v4 = vpop.f32.mrb[12].mxu0 }
 0x3fb   : > { %v1482_v5 = vpop.f32.mrb[3].mxu1  ;;  %v1487_v6 = vpop.f32.mrb[13].mxu0  ;;  %v771_v7 = vsel %vm568_vm2, %v756_v4, -inf }
 0x3fc   : > { %772 = vmax.xlane.f32.xlu1 %v771_v7  ;;  %v759_v9 = vpop.f32.mrb[14].mxu0 }
 0x3fd   : > { %v1488_v10 = vpop.f32.mrb[15].mxu0 }
 0x40d   : > { %903 = vrot.lane.b32.xlu1 %v1867_v31, %s1706_s23 }
 0x410   : > { %951 = vrot.lane.b32.xlu0 %v1870_v34, %s1706_s23  ;;  %s1420_s23 = sshll.u32 %s1802_s29, 7  ;;  %s1307_s29 = scalar_lea.sflag [#allocation3], %s429_s16 }
 0x411   : > { %s2005_s1 = scalar_lea.hbm %s2061_s13, %s1420_s23 }
 0x414   : > { %v764_v11 = vpop.xlane.xlu1 %763 }
 0x415   : > { %v774_v12 = vsub.f32 %v609_v53, %v764_v11 }
 0x417   : > { %v778_v13 = vmul.f32 1.442695, %v774_v12 }
 0x419   : > { %1614 = vpow2.f32 %v778_v13 }
 0x423   : > { %v1615_v14 = vpop.eup %1614 }
 0x424   : > { %v802_v15 = vpack.c.bf16 %v1615_v14, %v1615_v14  ;;  %v786_v32 = vsel %vm568_vm2, %v1615_v14, 0.0  ;;  %v1399_v14 = vld [vmem:[%s2054_s6] ss:$0 sm:$0xff] }
 0x426   : > { %1492 = vmatmul.mubr.msk.bf16.vlgmr.msra.gmra.mrb[4].mxu1 %vm568_vm2, %v802_v15 }
 0x427   : > { %1503 = vmatprep.mubr.msk.bf16.mxu1 %vm1701_vm1, %v1700_v8 }
 0x481   : > { %v767_v16 = vpop.xlane.xlu0 %766 }
 0x482   : > { %v775_v17 = vsub.f32 %v658_v58, %v767_v16 }
 0x484   : > { %v780_v18 = vmul.f32 1.442695, %v775_v17 }
 0x486   : > { %1616 = vpow2.f32 %v780_v18 }
 0x487   : > { %v770_v19 = vpop.xlane.xlu0 %769 }
 0x488   : > { %v776_v20 = vsub.f32 %v707_v63, %v770_v19 }
 0x489   : > { %v773_v21 = vpop.xlane.xlu1 %772 }
 0x48a   : > { %v782_v22 = vmul.f32 1.442695, %v776_v20  ;;  %v777_v23 = vsub.f32 %v756_v4, %v773_v21 }
 0x48b   : > { %v952_v28 = vpop.permute.xlu0 %951 }
 0x48c   : > { %1618 = vpow2.f32 %v782_v22  ;;  %v784_v24 = vmul.f32 1.442695, %v777_v23  ;;  %v957_v31 = vsel %vm811_vm3, %v952_v28, 0 }
 0x48d   : > { %v904_v25 = vpop.permute.xlu1 %903 }
 0x48e   : > { %1620 = vpow2.f32 %v784_v24  ;;  %v909_v26 = vsel %vm811_vm3, %v904_v25, 0 }
 0x48f   : > { %1502 = vmatpush3.bf16.msra.mxu1 %v909_v26 }
 0x490   : > { %v1617_v27 = vpop.eup %1616  ;;  %1513 = vmatprep.subr.bf16.mxu1 %v1700_v8 }
 0x491   : > { %v789_v29 = vsel %vm568_vm2, %v1617_v27, 0.0  ;;  %v803_v30 = vpack.c.bf16 %v1617_v27, %v1617_v27  ;;  %v1602_v27 = vld [vmem:[%s2057_s9] sm:$0xff]  }
 0x492   : > { %790 = vadd.xlane.f32.xlu1 %v789_v29 }
 0x493   : > { %1498 = vmatmul.mubr.msk.bf16.vlgmr.msra.gmra.mrb[16].mxu0 %vm568_vm2, %v803_v30 }
 0x494   : > { %1508 = vmatpush3.bf16.msra.mxu0 %v957_v31  ;;  %1509 = vmatprep.mubr.msk.bf16.mxu0 %vm1701_vm1, %v1700_v8 }
 0x495   : > { %1521 = vmatprep.subr.bf16.mxu0 %v1700_v8 }
 0x496   : > { %v1619_v33 = vpop.eup %1618  ;;  %787 = vadd.xlane.f32.xlu1 %v786_v32  ;;  %v1403_v32 = vld [vmem:[%s2055_s7] ss:$0 sm:$0xff] }
 0x497   : > { %v792_v34 = vsel %vm568_vm2, %v1619_v33, 0.0  ;;  %v804_v35 = vpack.c.bf16 %v1619_v33, %v1619_v33 }
 0x498   : > { %v1621_v36 = vpop.eup %1620  ;;  %793 = vadd.xlane.f32.xlu0 %v792_v34  ;;  %v1404_v34 = vld [vmem:[%s2056_s8] ss:$0 sm:$0xff] }
 0x499   : > { %1504 = vmatmul.mubr.msk.bf16.vlgmr.msra.gmra.mrb[8].mxu1 %vm568_vm2, %v804_v35  ;;  %v805_v37 = vpack.c.bf16 %v1621_v36, %v1621_v36  ;;  %v795_v38 = vsel %vm568_vm2, %v1621_v36, 0.0 }
 0x49a   : > { %1517 = vmatprep.mubr.msk.bf16.mxu1 %vm1701_vm1, %v1700_v8  ;;  %1514 = vmatpush3.bf16.msra.mxu1 %v1600_v44  ;;  %v1610_v44 = vld [vmem:[%s2059_s11 + $0x30] sm:$0xff]  }
 0x49b   : > { %1510 = vmatmul.mubr.msk.bf16.vlgmr.msra.gmra.mrb[20].mxu0 %vm568_vm2, %v805_v37  ;;  %1515 = vmatprep.subr.bf16.mxu1 %v1700_v8 }
 0x49c   : > { %796 = vadd.xlane.f32.xlu0 %v795_v38  ;;  %1525 = vmatprep.mubr.msk.bf16.mxu0 %vm1701_vm1, %v1700_v8  ;;  %v1604_v38 = vld [vmem:[%s2059_s11] sm:$0xff]  }
 0x49d   : > { %1522 = vmatpush3.bf16.msra.mxu0 %v1602_v27 }
 0x49e   : > { %1516 = vmatpush3.bf16.msra.mxu1 %v1601_v46  ;;  %1523 = vmatprep.subr.bf16.mxu0 %v1700_v8  ;;  %v1405_v46 = vld [vmem:[%s2058_s10] ss:$0 sm:$0xff] }
 0x49f   : > { %1529 = vmatprep.subr.bf16.mxu1 %v1700_v8 }
 0x4f9   : > { %v849_v39 = vpop.f32.mrb[4].mxu1 }
 0x4fa   : > { %v1493_v40 = vpop.f32.mrb[5].mxu1 }
 0x4fb   : > { %v852_v41 = vpop.f32.mrb[6].mxu1  ;;  %v1606_v40 = vld [vmem:[%s2059_s11 + $0x10] sm:$0xff]  }
 0x4fc   : > { %v1494_v42 = vpop.f32.mrb[7].mxu1  ;;  %v1607_v41 = vld [vmem:[%s2059_s11 + $0x18] sm:$0xff]  }
 0x4fd   : > { %v1608_v42 = vld [vmem:[%s2059_s11 + $0x20] sm:$0xff]  }
 0x51f   : > { %v791_v43 = vpop.xlane.xlu1 %790 }
 0x520   : > { %1622 = vrcp.f32 %v791_v43  ;;  %v1609_v43 = vld [vmem:[%s2059_s11 + $0x28] sm:$0xff]  }
 0x523   : > { %v788_v3 = vpop.xlane.xlu1 %787 }
 0x525   : > { %v794_v45 = vpop.xlane.xlu0 %793 }
 0x526   : > { %1624 = vrcp.f32 %v794_v45  ;;  %v1611_v45 = vld [vmem:[%s2059_s11 + $0x38] sm:$0xff]  }
 0x529   : > { %v797_v47 = vpop.xlane.xlu0 %796 }
 0x52a   : > { %v1623_v48 = vpop.eup %1622  ;;  %1626 = vrcp.f32 %v797_v47 }
 0x52b   : > { %1628 = vrcp.f32 %v788_v3 }
 0x530   : > { %v1625_v54 = vpop.eup %1624 }
 0x534   : > { %v1627_v62 = vpop.eup %1626 }
 0x535   : > { %v1629_v4 = vpop.eup %1628 }
 0x536   : > { %v999_v7 = vmul.f32 %v1629_v4, %v849_v39  ;;  %v1605_v39 = vld [vmem:[%s2059_s11 + $0x8] sm:$0xff]  }
 0x566   : > { %v897_v49 = vpop.f32.mrb[16].mxu0 }
 0x567   : > { %v1000_v50 = vmul.f32 %v1623_v48, %v897_v49  ;;  %v1499_v51 = vpop.f32.mrb[17].mxu0 }
 0x568   : > { %v900_v52 = vpop.f32.mrb[18].mxu0 }
 0x569   : > { %1004 = vrot.lane.b32.xlu0 %v1000_v50, %s1707_s20  ;;  %v1500_v53 = vpop.f32.mrb[19].mxu0  ;;  %s1383_s20 = sshll.u32 %s429_s16, 3 }
 0x56a   : > { %s431_s24 = scalar_lea.vmem [#allocation2], %s1383_s20 }
 0x56b   : > { %s1320_s30 = sshll.u32 %s431_s24, 4  ;;  %s2007_s30 = int_to_ptr.vmem [resolvable:$true] %s1320_s30 }
 0x56c   : > { %v945_v55 = vpop.f32.mrb[8].mxu1  ;;  %s1636_s20 = scalar_lea.vmem %s2007_s30, 128 }
 0x56d   : > { %v1001_v56 = vmul.f32 %v1625_v54, %v945_v55  ;;  %v1505_v57 = vpop.f32.mrb[9].mxu1  ;;  %p1637_p11 = scmp.ne.s32.totalorder %s2007_s30, %s1636_s20 }
 0x56e   : > { %v948_v58 = vpop.f32.mrb[10].mxu1  ;;  %v993_v59 = vpop.f32.mrb[20].mxu0 }
 0x56f   : > { %1008 = vrot.lane.b32.xlu1 %v1001_v56, %s1708_s21  ;;  %v1506_v60 = vpop.f32.mrb[11].mxu1  ;;  %v1511_v61 = vpop.f32.mrb[21].mxu0  ;;  %v1002_v1 = vmul.f32 %v1627_v62, %v993_v59  ;;  %v1410_v58 = vld [vmem:[%s2060_s12] ss:$0 sm:$0xff]  ;;  %p1638_p12 = pnand %p1637_p11, %p1819_p5  ;;  %s1710_s21 = smov [#allocation2]  }
 0x570   : > { %v996_v63 = vpop.f32.mrb[22].mxu0 }
 0x571   : > { %v1512_v2 = vpop.f32.mrb[23].mxu0  ;;  %p1639_p13 = pneg %p1638_p12 }
 0x573   : > { %1012 = vrot.lane.b32.xlu1 %v1002_v1, %s1709_s22  ;;  %s1640_s22 = sshll.u32 %s1710_s21, 4  ;;  %s1641_s22 = int_to_ptr.vmem [resolvable:$false] %s1640_s22 }
 0x574   : > { %s1642_s2 = scalar_lea.vmem %s1641_s22, 256  ;;  %p1643_p0 = scmp.lt.s32.totalorder %s2007_s30, %s1641_s22 }
 0x575   : > { %p1644_p1 = scmp.lt.s32.totalorder %s1642_s2, %s1636_s20 }
 0x577   : > { %p1645_p2 = por %p1644_p1, %p1643_p0 }
 0x579   : > { %p1646_p3 = pnand %p1645_p2, %p1639_p13 }
 0x5db   : > { %v1005_v5 = vpop.permute.xlu0 %1004 }
 0x5dc   : > { %v1015_v9 = vsel %vm568_vm2, %v999_v7, %v1005_v5 }
 0x5e1   : > { %v1009_v6 = vpop.permute.xlu1 %1008 }
 0x5e2   : > { %v1017_v10 = vsel %vm1016_vm4, %v1015_v9, %v1009_v6 }
 0x5e5   : > { %v1013_v11 = vpop.permute.xlu1 %1012 }
 0x5e6   : > { %v1019_v12 = vsel %vm1018_vm5, %v1017_v10, %v1013_v11 }
 0x5e7   : > { %v1020_v13 = vpack.c.bf16 %v1019_v12, %v1019_v12 }
 0x5e9   : > { %1518 = vmatmul.mubr.msk.bf16.vlgmr.msra.gmra.mrb[12].mxu1 %vm438_vm0, %v1020_v13 }
 0x5ea   : > { %1545 = vmatprep.mubr.msk.bf16.mxu1 %vm1701_vm1, %v1700_v8  ;;  %1530 = vmatpush3.bf16.msra.mxu1 %v1604_v38 }
 0x5eb   : > { %1531 = vmatprep.subr.bf16.mxu1 %v1700_v8 }
 0x5ee   : > { %1532 = vmatpush3.bf16.msra.mxu1 %v1605_v39 }
 0x5ef   : > { %1533 = vmatprep.subr.bf16.mxu1 %v1700_v8 }
 0x5f2   : > { %1534 = vmatpush3.bf16.msra.mxu1 %v1606_v40 }
 0x5f3   : > { %1535 = vmatprep.subr.bf16.mxu1 %v1700_v8 }
 0x5f6   : > { %1536 = vmatpush3.bf16.msra.mxu1 %v1607_v41 }
 0x5f7   : > { %1537 = vmatprep.subr.bf16.mxu1 %v1700_v8 }
 0x5fa   : > { %1538 = vmatpush3.bf16.msra.mxu1 %v1608_v42 }
 0x5fb   : > { %1539 = vmatprep.subr.bf16.mxu1 %v1700_v8 }
 0x5fe   : > { %1540 = vmatpush3.bf16.msra.mxu1 %v1609_v43 }
 0x5ff   : > { %1541 = vmatprep.subr.bf16.mxu1 %v1700_v8 }
 0x602   : > { %1542 = vmatpush3.bf16.msra.mxu1 %v1610_v44 }
 0x603   : > { %1543 = vmatprep.subr.bf16.mxu1 %v1700_v8 }
 0x606   : > { %1544 = vmatpush3.bf16.msra.mxu1 %v1611_v45 }
 0x6bc   : > { %v1081_v15 = vpop.f32.mrb[12].mxu1 }
 0x6bd   : > { %v1082_v16 = vadd.f32 %v1399_v14, %v1081_v15  ;;  %v1519_v17 = vpop.f32.mrb[13].mxu1 }
 0x6be   : > { %v1084_v18 = vpop.f32.mrb[14].mxu1 }
 0x6bf   : > { %v1942_v19 = vadd.f32 %v1082_v16, %v1834_v0  ;;  %v1520_v20 = vpop.f32.mrb[15].mxu1  ;;  %v1603_v0 = vld [vmem:[%s2057_s9 + $0x8] sm:$0xff]  }
 0x6c0   : > { %1524 = vmatpush3.bf16.msra.mxu0 %v1603_v0 }
 0x6c1   : > { %v1088_v21 = vsel %vm438_vm0, %v1942_v19, 0.0 }
 0x6c2   : > { %1089 = vadd.xlane.f32.xlu0 %v1088_v21 }
 0x74f   : > { %v1090_v22 = vpop.xlane.xlu0 %1089 }
 0x750   : > { %v1091_v23 = vmul.f32 0.03125, %v1090_v22 }
 0x752   : > { %v1092_v24 = vsub.f32 %v1942_v19, %v1091_v23 }
 0x754   : > { %v1093_v25 = vmul.f32 %v1092_v24, %v1092_v24 }
 0x756   : > { %v1094_v26 = vsel %vm438_vm0, %v1093_v25, 0.0 }
 0x757   : > { %1095 = vadd.xlane.f32.xlu1 %v1094_v26 }
 0x7e4   : > { %v1096_v28 = vpop.xlane.xlu1 %1095 }
 0x7e5   : > { %v1097_v29 = vmul.f32 0.03125, %v1096_v28 }
 0x7e7   : > { %v1098_v30 = vadd.f32 1e-05, %v1097_v29 }
 0x7e9   : > { %1630 = vrsqrt.f32 %v1098_v30 }
 0x7f3   : > { %v1631_v31 = vpop.eup %1630 }
 0x7f4   : > { %v1100_v33 = vmul.f32 %v1631_v31, %v1092_v24 }
 0x7f6   : > { %v1108_v35 = vmul.f32 %v1403_v32, %v1100_v33 }
 0x7f8   : > { %v1116_v36 = vadd.f32 %v1404_v34, %v1108_v35 }
 0x7fa   : > { %v1117_v37 = vpack.c.bf16 %v1116_v36, %v1116_v36 }
 0x7fc   : > { %1526 = vmatmul.mubr.msk.bf16.vlgmr.msra.gmra.mrb[24].mxu0 %vm438_vm0, %v1117_v37 }
 0x8cf   : > { %v1178_v47 = vpop.f32.mrb[24].mxu0 }
 0x8d0   : > { %v1179_v48 = vadd.f32 %v1405_v46, %v1178_v47  ;;  %v1527_v49 = vpop.f32.mrb[25].mxu0 }
 0x8d1   : > { %v1181_v50 = vpop.f32.mrb[26].mxu0 }
 0x8d2   : > { %v1409_v51 = vmul.f32 -1.702, %v1179_v48  ;;  %v1528_v52 = vpop.f32.mrb[27].mxu0 }
 0x8d4   : > { %v1186_v53 = vmul.f32 1.442695, %v1409_v51 }
 0x8d6   : > { %1632 = vpow2.f32 %v1186_v53 }
 0x8e0   : > { %v1633_v8 = vpop.eup %1632 }
 0x8e1   : > { %v1188_v54 = vadd.f32 1.0, %v1633_v8 }
 0x8e3   : > { %1634 = vrcp.f32 %v1188_v54 }
 0x8ed   : > { %v1635_v55 = vpop.eup %1634 }
 0x8ee   : > { %v1191_v56 = vmul.f32 %v1635_v55, %v1179_v48 }
 0x8f0   : > { %v1192_v57 = vpack.c.bf16 %v1191_v56, %v1191_v56 }
 0x8f2   : > { %1546 = vmatmul.mubr.bf16.vlgmr.msra.gmra.mrb[16].mxu1 %v1192_v57 }
 0x9c5   : > { %v1298_v59 = vpop.f32.mrb[16].mxu1 }
 0x9c6   : > { %v1299_v60 = vadd.f32 %v1410_v58, %v1298_v59  ;;  %v1547_v61 = vpop.f32.mrb[17].mxu1 }
 0x9c7   : > { %v1301_v62 = vpop.f32.mrb[18].mxu1 }
 0x9c8   : > { %v1304_v63 = vadd.f32 %v1299_v60, %v1942_v19  ;;  %v1548_v1 = vpop.f32.mrb[19].mxu1 }
 0x9ca   : > { %1305 = vst.msk [vmem:[%s431_s24] sm:$0xff] %vm438_vm0, %v1304_v63 }
 0x9cb   : > { %1649 = shalt.err (!%p1646_p3)
}
 0x9cc   : > { %s1650_s0 = scalar_lea.hbm %s2005_s1, 128  ;;  %s1654_s24 = scalar_lea.hbm %s2061_s13, 256 }
 0x9cd   : > { %p1651_p4 = scmp.ne.s32.totalorder %s2005_s1, %s1650_s0  ;;  %p1655_p9 = scmp.lt.u32.totalorder %s2005_s1, %s2061_s13 }
 0x9ce   : > { %p1656_p10 = scmp.lt.u32.totalorder %s1654_s24, %s1650_s0  ;;  %p1658_p12 = scmp.lt.u32.totalorder %s1650_s0, %s2005_s1 }
 0x9cf   : > { %p1652_p7 = pnand %p1651_p4, %p1819_p5 }
 0x9d0   : > { %p1657_p11 = por %p1656_p10, %p1655_p9 }
 0x9d1   : > { %p1653_p8 = pneg %p1652_p7 }
 0x9d2   : > { %p1659_p13 = por %p1658_p12, %p1657_p11 }
 0x9d4   : > { %p1660_p0 = pnand %p1659_p13, %p1653_p8 }
 0x9d6   : > { %1663 = shalt.err (!%p1660_p0)
}
 0x9d7   : > { %1549 = dma.vmem_to_hbm [thread:$0]  (%p1819_p5), %s2007_s30, 128, %s2005_s1, %s1307_s29  }
 0x9d8 PF: > { %p1555_p1 = scmp.ge.s32.totalorder %s1698_s28, 2  ;;  %s1332_s2 = sand.u32 1, %s1686_s25  }
 0x9d9   : > { %s1333_s20 = scalar_lea.sflag [#allocation3], %s1332_s2 }
 0x9da   : > { %p1552_p2 = pnand %p1555_p1, %p1823_p6 }
 0x9dc   : > { %1681 = dma.done.wait (!%p1552_p2), %s1333_s20, 128  }
 0x9dd   : > { %1683 = vsyncadd (!%p1552_p2), %s1333_s20, 4294967168  ;;  %p23_p3 = scmp.ge.s32.totalorder %s1806_s14, 4   ;;  %s2070_s25 = smov %s1690_s26 }
 0x9de   : > { %s2071_s26 = smov %s1694_s27  ;;  %s2072_s27 = smov %s1817_s17 }
 0x9df   : > { %s2073_s28 = smov %s1806_s14  ;;  %25 = sbr.rel (!%p23_p3) target bundleno = 7 (0x7), region = 107 }
 0x9e6   :  { %1338 = vsyncpa [#allocation3], 1 }
 0x9e7   :  { %1340 = vsyncpa [#allocation3 + $0x1], 1 }

</bundles_post_ra>
